<compile_context>
chip_gen: v7x
topology: tpu7x:2x2x1
jax: 0.10.0
libtpu: 0.0.40
codegen_flags: <defaults>
</compile_context>

<pallas_src>
import jax
import jax.numpy as jnp
from jax.experimental import pallas as pl
from jax.experimental.pallas import tpu as pltpu

DIM = 1
HID = 256
MAX_BATCH_TILE = 1024  # lanes of batch per grid step (multiple of 128)


def _round_up(n, m):
    return ((n + m - 1) // m) * m


def escape_mlp_kernel(x_ref, w1_ref, b1_ref, w2_ref, b2_ref,
                      w3_ref, b3_ref, w4_ref, b4_ref, o_ref):
    # Transposed layout: activations are (features, batch_tile).
    x = x_ref[...]                                   # (1, TB) f32

    def leaky_relu(h):
        return jnp.maximum(h, 0.01 * h)              # vmul + vmax (VPU)

    # Layer 1 (in_features = 1): outer product on the VPU, not the MXU.
    h = leaky_relu(w1_ref[...] * x + b1_ref[...])    # (256,1)*(1,TB) -> (256, TB)

    # Layers 2 & 3: full 256x256 MXU matmuls, bf16 operands, f32 accumulate.
    h = jnp.dot(w2_ref[...], h.astype(jnp.bfloat16),
                preferred_element_type=jnp.float32) + b2_ref[...]
    h = leaky_relu(h)
    h = jnp.dot(w3_ref[...], h.astype(jnp.bfloat16),
                preferred_element_type=jnp.float32) + b3_ref[...]
    h = leaky_relu(h)

    # Layer 4 (out_features = 1): VPU multiply + sublane reduction (no N=1 matmul).
    y = jnp.sum(w4_ref[...] * h, axis=0, keepdims=True) + b4_ref[...]   # (1, TB)
    o_ref[...] = jax.nn.sigmoid(y)


def escape_model_forward(x, params, *, max_batch_tile=MAX_BATCH_TILE):
    """x: (B, 1) float32. params: PyTorch-layout weights (out, in), biases (out, 1)."""
    B = x.shape[0]
    assert x.shape == (B, DIM)

    # Lane-aligned batch tile; pad B up and slice the output back afterwards.
    tb = min(max_batch_tile, _round_up(max(B, 1), 128))
    Bp = _round_up(B, tb)
    xt = jnp.pad(x.astype(jnp.float32).reshape(1, B), ((0, 0), (0, Bp - B)))

    w1 = params["w1"].astype(jnp.float32)   # (256, 1)
    b1 = params["b1"].astype(jnp.float32)   # (256, 1)
    w2 = params["w2"].astype(jnp.bfloat16)  # (256, 256) MXU operand
    b2 = params["b2"].astype(jnp.float32)   # (256, 1)
    w3 = params["w3"].astype(jnp.bfloat16)  # (256, 256) MXU operand
    b3 = params["b3"].astype(jnp.float32)   # (256, 1)
    w4 = params["w4"].astype(jnp.float32)   # (256, 1)
    b4 = params["b4"].astype(jnp.float32)   # (1, 1)

    full = lambda arr: pl.BlockSpec(arr.shape, lambda i: (0, 0))
    grid = (Bp // tb,)

    out_t = pl.pallas_call(
        escape_mlp_kernel,
        out_shape=jax.ShapeDtypeStruct((1, Bp), jnp.float32),
        grid_spec=pltpu.PrefetchScalarGridSpec(
            num_scalar_prefetch=0,
            grid=grid,
            in_specs=[
                pl.BlockSpec((1, tb), lambda i: (0, i)),   # x slab (lane-dense)
                full(w1), full(b1),
                full(w2), full(b2),
                full(w3), full(b3),
                full(w4), full(b4),
            ],
            out_specs=pl.BlockSpec((1, tb), lambda i: (0, i)),  # lane-dense output
        ),
        compiler_params=pltpu.CompilerParams(
            dimension_semantics=("parallel",)),
    )(xt, w1, b1, w2, b2, w3, b3, w4, b4)

    return out_t.reshape(Bp, 1)[:B]


def init_params(key):
    """PyTorch nn.Linear default init; weights stored (out, in), biases (out, 1)."""
    keys = jax.random.split(key, 8)

    def lin(kw, kb, fan_in, fan_out):
        bound = 1.0 / (fan_in ** 0.5)
        w = jax.random.uniform(kw, (fan_out, fan_in), jnp.float32, -bound, bound)
        b = jax.random.uniform(kb, (fan_out, 1), jnp.float32, -bound, bound)
        return w, b

    w1, b1 = lin(keys[0], keys[1], DIM, HID)
    w2, b2 = lin(keys[2], keys[3], HID, HID)
    w3, b3 = lin(keys[4], keys[5], HID, HID)
    w4t, b4 = lin(keys[6], keys[7], HID, 1)          # (1, 256), (1, 1)
    return dict(w1=w1, b1=b1, w2=w2, b2=b2, w3=w3, b3=b3, w4=w4t.T, b4=b4)


def reference_forward(x, p):
    """Pure-f32 JAX reference matching the PyTorch module in eval mode."""
    leaky = lambda h: jnp.maximum(h, 0.01 * h)
    h = leaky(x @ p["w1"].T + p["b1"].T)
    h = leaky(h @ p["w2"].T + p["b2"].T)
    h = leaky(h @ p["w3"].T + p["b3"].T)
    return jax.nn.sigmoid(h @ p["w4"] + p["b4"])


if __name__ == "__main__":
    key = jax.random.PRNGKey(0)
    kx, kp = jax.random.split(key)
    params = init_params(kp)

    # Small batches, including a non-multiple-of-128 size (exercises padding)
    # and one large enough to run a multi-step grid.
    for B in (8, 200, 2000):
        x = jax.random.normal(jax.random.fold_in(kx, B), (B, DIM), jnp.float32)
        out = jax.block_until_ready(escape_model_forward(x, params))
        ref = reference_forward(x, params)
        assert out.shape == (B, 1)
        err = float(jnp.max(jnp.abs(out - ref)))
        # bf16 middle weights vs f32 reference -> allow small tolerance.
        assert err < 1e-2, f"mismatch vs reference at B={B}: max abs err {err}"

    print("KERNEL_OK")
</pallas_src>

<mosaic_0001>
module attributes {stable_mosaic.version = 11 : i64} {
  func.func @escape_mlp_kernel(%arg0: i32, %arg1: memref<1x128xf32, #tpu.memory_space<vmem>>, %arg2: memref<256x1xf32, #tpu.memory_space<vmem>>, %arg3: memref<256x1xf32, #tpu.memory_space<vmem>>, %arg4: memref<256x256xbf16, #tpu.memory_space<vmem>>, %arg5: memref<256x1xf32, #tpu.memory_space<vmem>>, %arg6: memref<256x256xbf16, #tpu.memory_space<vmem>>, %arg7: memref<256x1xf32, #tpu.memory_space<vmem>>, %arg8: memref<256x1xf32, #tpu.memory_space<vmem>>, %arg9: memref<1x1xf32, #tpu.memory_space<vmem>>, %arg10: memref<1x128xf32, #tpu.memory_space<vmem>>) attributes {dimension_semantics = [#tpu.dimension_semantics<parallel>], iteration_bounds = array<i64: 1>, scalar_prefetch = 0 : i64, scratch_operands = 0 : i64, tpu.core_type = #tpu.core_type<tc>, window_params = [{transform_indices = @transform_0, window_bounds = array<i64: 1, 128>}, {pipeline_mode = #tpu.pipeline_mode<synchronous>, transform_indices = @transform_1, window_bounds = array<i64: 256, 1>}, {pipeline_mode = #tpu.pipeline_mode<synchronous>, transform_indices = @transform_2, window_bounds = array<i64: 256, 1>}, {pipeline_mode = #tpu.pipeline_mode<synchronous>, transform_indices = @transform_3, window_bounds = array<i64: 256, 256>}, {pipeline_mode = #tpu.pipeline_mode<synchronous>, transform_indices = @transform_4, window_bounds = array<i64: 256, 1>}, {pipeline_mode = #tpu.pipeline_mode<synchronous>, transform_indices = @transform_5, window_bounds = array<i64: 256, 256>}, {pipeline_mode = #tpu.pipeline_mode<synchronous>, transform_indices = @transform_6, window_bounds = array<i64: 256, 1>}, {pipeline_mode = #tpu.pipeline_mode<synchronous>, transform_indices = @transform_7, window_bounds = array<i64: 256, 1>}, {pipeline_mode = #tpu.pipeline_mode<synchronous>, transform_indices = @transform_8, window_bounds = array<i64: 1, 1>}, {transform_indices = @transform_9, window_bounds = array<i64: 1, 128>}]} {
    %c0 = arith.constant 0 : index
    %c0_0 = arith.constant 0 : index
    %0 = vector.load %arg1[%c0, %c0_0] : memref<1x128xf32, #tpu.memory_space<vmem>>, vector<1x128xf32>
    %c0_1 = arith.constant 0 : index
    %c0_2 = arith.constant 0 : index
    %1 = vector.load %arg2[%c0_1, %c0_2] : memref<256x1xf32, #tpu.memory_space<vmem>>, vector<256x1xf32>
    %2 = vector.broadcast %1 : vector<256x1xf32> to vector<256x128xf32>
    %3 = vector.broadcast %0 : vector<1x128xf32> to vector<256x128xf32>
    %4 = arith.mulf %2, %3 : vector<256x128xf32>
    %c0_3 = arith.constant 0 : index
    %c0_4 = arith.constant 0 : index
    %5 = vector.load %arg3[%c0_3, %c0_4] : memref<256x1xf32, #tpu.memory_space<vmem>>, vector<256x1xf32>
    %6 = vector.broadcast %5 : vector<256x1xf32> to vector<256x128xf32>
    %7 = arith.addf %4, %6 : vector<256x128xf32>
    %cst = arith.constant 0.00999999977 : f32
    %8 = vector.broadcast %cst : f32 to vector<256x128xf32>
    %9 = arith.mulf %8, %7 : vector<256x128xf32>
    %10 = arith.maximumf %7, %9 : vector<256x128xf32>
    %c0_5 = arith.constant 0 : index
    %c0_6 = arith.constant 0 : index
    %11 = vector.load %arg4[%c0_5, %c0_6] : memref<256x256xbf16, #tpu.memory_space<vmem>>, vector<256x256xbf16>
    %12 = arith.truncf %10 : vector<256x128xf32> to vector<256x128xbf16>
    %cst_7 = arith.constant dense<0.000000e+00> : vector<256x128xf32>
    %13 = tpu.matmul %11, %12, %cst_7 {dimension_numbers = #tpu.dot_dimension_numbers<[1], [0], [0], [1], [0, 0, 1, 1], [], []>} : vector<256x256xbf16>, vector<256x128xbf16>, vector<256x128xf32> -> vector<256x128xf32>
    %c0_8 = arith.constant 0 : index
    %c0_9 = arith.constant 0 : index
    %14 = vector.load %arg5[%c0_8, %c0_9] : memref<256x1xf32, #tpu.memory_space<vmem>>, vector<256x1xf32>
    %15 = vector.broadcast %14 : vector<256x1xf32> to vector<256x128xf32>
    %16 = arith.addf %13, %15 : vector<256x128xf32>
    %cst_10 = arith.constant 0.00999999977 : f32
    %17 = vector.broadcast %cst_10 : f32 to vector<256x128xf32>
    %18 = arith.mulf %17, %16 : vector<256x128xf32>
    %19 = arith.maximumf %16, %18 : vector<256x128xf32>
    %c0_11 = arith.constant 0 : index
    %c0_12 = arith.constant 0 : index
    %20 = vector.load %arg6[%c0_11, %c0_12] : memref<256x256xbf16, #tpu.memory_space<vmem>>, vector<256x256xbf16>
    %21 = arith.truncf %19 : vector<256x128xf32> to vector<256x128xbf16>
    %cst_13 = arith.constant dense<0.000000e+00> : vector<256x128xf32>
    %22 = tpu.matmul %20, %21, %cst_13 {dimension_numbers = #tpu.dot_dimension_numbers<[1], [0], [0], [1], [0, 0, 1, 1], [], []>} : vector<256x256xbf16>, vector<256x128xbf16>, vector<256x128xf32> -> vector<256x128xf32>
    %c0_14 = arith.constant 0 : index
    %c0_15 = arith.constant 0 : index
    %23 = vector.load %arg7[%c0_14, %c0_15] : memref<256x1xf32, #tpu.memory_space<vmem>>, vector<256x1xf32>
    %24 = vector.broadcast %23 : vector<256x1xf32> to vector<256x128xf32>
    %25 = arith.addf %22, %24 : vector<256x128xf32>
    %cst_16 = arith.constant 0.00999999977 : f32
    %26 = vector.broadcast %cst_16 : f32 to vector<256x128xf32>
    %27 = arith.mulf %26, %25 : vector<256x128xf32>
    %28 = arith.maximumf %25, %27 : vector<256x128xf32>
    %c0_17 = arith.constant 0 : index
    %c0_18 = arith.constant 0 : index
    %29 = vector.load %arg8[%c0_17, %c0_18] : memref<256x1xf32, #tpu.memory_space<vmem>>, vector<256x1xf32>
    %30 = vector.broadcast %29 : vector<256x1xf32> to vector<256x128xf32>
    %31 = arith.mulf %30, %28 : vector<256x128xf32>
    %cst_19 = arith.constant dense<0.000000e+00> : vector<128xf32>
    %32 = vector.multi_reduction <add>, %31, %cst_19 [0] : vector<256x128xf32> to vector<128xf32>
    %33 = vector.shape_cast %32 : vector<128xf32> to vector<1x128xf32>
    %c0_20 = arith.constant 0 : index
    %c0_21 = arith.constant 0 : index
    %34 = vector.load %arg9[%c0_20, %c0_21] : memref<1x1xf32, #tpu.memory_space<vmem>>, vector<1x1xf32>
    %35 = vector.broadcast %34 : vector<1x1xf32> to vector<1x128xf32>
    %36 = arith.addf %33, %35 : vector<1x128xf32>
    %37 = arith.negf %36 : vector<1x128xf32>
    %38 = math.exp %37 : vector<1x128xf32>
    %cst_22 = arith.constant 1.000000e+00 : f32
    %39 = vector.broadcast %cst_22 : f32 to vector<1x128xf32>
    %40 = arith.addf %39, %38 : vector<1x128xf32>
    %41 = arith.divf %39, %40 : vector<1x128xf32>
    %c0_23 = arith.constant 0 : index
    %c0_24 = arith.constant 0 : index
    %42 = vector.load %arg10[%c0_23, %c0_24] : memref<1x128xf32, #tpu.memory_space<vmem>>, vector<1x128xf32>
    tpu.vector_store %arg10[%c0_23, %c0_24], %41 {strides = array<i32>} : memref<1x128xf32, #tpu.memory_space<vmem>>, vector<1x128xf32>,
    return
  }
  func.func @transform_0(%arg0: i32) -> (i32, i32) {
    %c0_i32 = arith.constant 0 : i32
    %c0_i32_0 = arith.constant 0 : i32
    return %c0_i32, %arg0 : i32, i32
  }
  func.func @transform_1(%arg0: i32) -> (i32, i32) {
    %c0_i32 = arith.constant 0 : i32
    %c0_i32_0 = arith.constant 0 : i32
    %c0_i32_1 = arith.constant 0 : i32
    return %c0_i32, %c0_i32_0 : i32, i32
  }
  func.func @transform_2(%arg0: i32) -> (i32, i32) {
    %c0_i32 = arith.constant 0 : i32
    %c0_i32_0 = arith.constant 0 : i32
    %c0_i32_1 = arith.constant 0 : i32
    return %c0_i32, %c0_i32_0 : i32, i32
  }
  func.func @transform_3(%arg0: i32) -> (i32, i32) {
    %c0_i32 = arith.constant 0 : i32
    %c0_i32_0 = arith.constant 0 : i32
    %c0_i32_1 = arith.constant 0 : i32
    return %c0_i32, %c0_i32_0 : i32, i32
  }
  func.func @transform_4(%arg0: i32) -> (i32, i32) {
    %c0_i32 = arith.constant 0 : i32
    %c0_i32_0 = arith.constant 0 : i32
    %c0_i32_1 = arith.constant 0 : i32
    return %c0_i32, %c0_i32_0 : i32, i32
  }
  func.func @transform_5(%arg0: i32) -> (i32, i32) {
    %c0_i32 = arith.constant 0 : i32
    %c0_i32_0 = arith.constant 0 : i32
    %c0_i32_1 = arith.constant 0 : i32
    return %c0_i32, %c0_i32_0 : i32, i32
  }
  func.func @transform_6(%arg0: i32) -> (i32, i32) {
    %c0_i32 = arith.constant 0 : i32
    %c0_i32_0 = arith.constant 0 : i32
    %c0_i32_1 = arith.constant 0 : i32
    return %c0_i32, %c0_i32_0 : i32, i32
  }
  func.func @transform_7(%arg0: i32) -> (i32, i32) {
    %c0_i32 = arith.constant 0 : i32
    %c0_i32_0 = arith.constant 0 : i32
    %c0_i32_1 = arith.constant 0 : i32
    return %c0_i32, %c0_i32_0 : i32, i32
  }
  func.func @transform_8(%arg0: i32) -> (i32, i32) {
    %c0_i32 = arith.constant 0 : i32
    %c0_i32_0 = arith.constant 0 : i32
    %c0_i32_1 = arith.constant 0 : i32
    return %c0_i32, %c0_i32_0 : i32, i32
  }
  func.func @transform_9(%arg0: i32) -> (i32, i32) {
    %c0_i32 = arith.constant 0 : i32
    %c0_i32_0 = arith.constant 0 : i32
    return %c0_i32, %arg0 : i32, i32
  }
}

</mosaic_0001>

<bundles_post_ra>
// kernel: tpu_custom_call.1
= control target key start
LH: loop header
LB: loop body
LE: loop exit
PB: predicated region body
PF: predicated region fallthrough
CT: control target
= control target key end

     0   :  { %s3415_s0 = inlined_call_operand.vmem [shape: f32[1,128], index: 0, kind: input, shape index: {}]   ;;  %s3416_s1 = inlined_call_operand.vmem [shape: f32[256,1], index: 1, kind: input, shape index: {}]   ;;  %s3417_s2 = inlined_call_operand.vmem [shape: f32[256,1], index: 2, kind: input, shape index: {}]   ;;  %s3418_s3 = inlined_call_operand.vmem [shape: bf16[256,256], index: 3, kind: input, shape index: {}]   ;;  %s3419_s4 = inlined_call_operand.vmem [shape: f32[256,1], index: 4, kind: input, shape index: {}]   ;;  %s3420_s5 = inlined_call_operand.vmem [shape: bf16[256,256], index: 5, kind: input, shape index: {}]   ;;  %s3421_s6 = inlined_call_operand.vmem [shape: f32[256,1], index: 6, kind: input, shape index: {}]   ;;  %s3422_s7 = inlined_call_operand.vmem [shape: f32[256,1], index: 7, kind: input, shape index: {}]   ;;  %s3423_s8 = inlined_call_operand.<no memory space> [shape: f32[1,1], index: 8, kind: input, shape index: {}]   ;;  %s3424_s9 = inlined_call_operand.hbm [shape: f32[1,128], index: 9, kind: output, shape index: {}]  }
   0x1   :  { %v14_v0 = vstv %s3423_s8 }
   0x2   :  { %15 = vst [vmem:[#allocation2] sm:$0x1] %v14_v0 }
   0x3   :  { %v53_v1 = vld [vmem:[%s3416_s1 + $0x80] sm:$0xff]  ;;  %v2516_v3 = vmov 0   ;;  %v54_v4 = vld [vmem:[%s3416_s1 + $0x88] sm:$0xff]  ;;  %v55_v10 = vld [vmem:[%s3416_s1 + $0x90] sm:$0xff] }
   0x4   :  { %v37_v2 = vld [vmem:[%s3416_s1] sm:$0xff]  ;;  %2391 = vset.pattern.permute.xlu1 %v2516_v3  ;;  %2390 = vset.pattern.permute.xlu0 %v2516_v3  ;;  %v38_v5 = vld [vmem:[%s3416_s1 + $0x8] sm:$0xff]  ;;  %v56_v11 = vld [vmem:[%s3416_s1 + $0x98] sm:$0xff] }
   0x5   :  { %151 = vperm.xlu0 %2390, %v53_v1   ;;  %71 = vperm.xlu1 %2391, %v37_v2   ;;  %v283_v6 = vld [vmem:[%s3417_s2 + $0x80] sm:$0xff]  ;;  %v284_v7 = vld [vmem:[%s3417_s2 + $0x88] sm:$0xff]  ;;  %v39_v12 = vld [vmem:[%s3416_s1 + $0x10] sm:$0xff] }
   0x6   :  { %v267_v8 = vld [vmem:[%s3417_s2] sm:$0xff]  ;;  %v268_v9 = vld [vmem:[%s3417_s2 + $0x8] sm:$0xff]  ;;  %v40_v13 = vld [vmem:[%s3416_s1 + $0x18] sm:$0xff] }
   0x7   :  { %v285_v14 = vld [vmem:[%s3417_s2 + $0x90] sm:$0xff]  ;;  %v286_v15 = vld [vmem:[%s3417_s2 + $0x98] sm:$0xff]  ;;  %v57_v18 = vld [vmem:[%s3416_s1 + $0xa0] sm:$0xff] }
   0x8   :  { %v269_v16 = vld [vmem:[%s3417_s2 + $0x10] sm:$0xff]  ;;  %v270_v17 = vld [vmem:[%s3417_s2 + $0x18] sm:$0xff]  ;;  %v58_v19 = vld [vmem:[%s3416_s1 + $0xa8] sm:$0xff] }
   0x9   :  { %156 = vperm.xlu0 %2390, %v54_v4   ;;  %76 = vperm.xlu1 %2391, %v38_v5   ;;  %v41_v20 = vld [vmem:[%s3416_s1 + $0x20] sm:$0xff]  ;;  %v42_v21 = vld [vmem:[%s3416_s1 + $0x28] sm:$0xff]  ;;  %v59_v26 = vld [vmem:[%s3416_s1 + $0xb0] sm:$0xff] }
   0xa   :  { %v287_v22 = vld [vmem:[%s3417_s2 + $0xa0] sm:$0xff]  ;;  %v288_v23 = vld [vmem:[%s3417_s2 + $0xa8] sm:$0xff]  ;;  %v60_v27 = vld [vmem:[%s3416_s1 + $0xb8] sm:$0xff] }
   0xb   :  { %v271_v24 = vld [vmem:[%s3417_s2 + $0x20] sm:$0xff]  ;;  %v272_v25 = vld [vmem:[%s3417_s2 + $0x28] sm:$0xff]  ;;  %v43_v28 = vld [vmem:[%s3416_s1 + $0x30] sm:$0xff] }
   0xc   :  { %v44_v29 = vld [vmem:[%s3416_s1 + $0x38] sm:$0xff] }
   0xd   :  { %381 = vperm.xlu0 %2390, %v283_v6   ;;  %386 = vperm.xlu1 %2391, %v284_v7  }
  0x11   :  { %301 = vperm.xlu0 %2390, %v267_v8   ;;  %306 = vperm.xlu1 %2391, %v268_v9  }
  0x15   :  { %161 = vperm.xlu0 %2390, %v55_v10   ;;  %166 = vperm.xlu1 %2391, %v56_v11  }
  0x19   :  { %81 = vperm.xlu0 %2390, %v39_v12   ;;  %86 = vperm.xlu1 %2391, %v40_v13  }
  0x1d   :  { %391 = vperm.xlu0 %2390, %v285_v14   ;;  %396 = vperm.xlu1 %2391, %v286_v15  }
  0x21   :  { %311 = vperm.xlu0 %2390, %v269_v16   ;;  %316 = vperm.xlu1 %2391, %v270_v17  }
  0x25   :  { %171 = vperm.xlu0 %2390, %v57_v18   ;;  %176 = vperm.xlu1 %2391, %v58_v19  }
  0x29   :  { %91 = vperm.xlu0 %2390, %v41_v20   ;;  %96 = vperm.xlu1 %2391, %v42_v21  }
  0x2d   :  { %401 = vperm.xlu0 %2390, %v287_v22   ;;  %406 = vperm.xlu1 %2391, %v288_v23  }
  0x31   :  { %321 = vperm.xlu0 %2390, %v271_v24   ;;  %326 = vperm.xlu1 %2391, %v272_v25  }
  0x35   :  { %181 = vperm.xlu0 %2390, %v59_v26   ;;  %186 = vperm.xlu1 %2391, %v60_v27  }
  0x36   :  { %16 = vsyncpa [#allocation4], 0  ;;  %v289_v30 = vld [vmem:[%s3417_s2 + $0xb0] sm:$0xff]  ;;  %v290_v31 = vld [vmem:[%s3417_s2 + $0xb8] sm:$0xff] }
  0x37   :  { %v273_v32 = vld [vmem:[%s3417_s2 + $0x30] sm:$0xff]  ;;  %v274_v33 = vld [vmem:[%s3417_s2 + $0x38] sm:$0xff]  ;;  %v61_v34 = vld [vmem:[%s3416_s1 + $0xc0] sm:$0xff] }
  0x38   :  { %v62_v35 = vld [vmem:[%s3416_s1 + $0xc8] sm:$0xff]  ;;  %v45_v36 = vld [vmem:[%s3416_s1 + $0x40] sm:$0xff]  ;;  %v63_v42 = vld [vmem:[%s3416_s1 + $0xd0] sm:$0xff] }
  0x39   :  { %101 = vperm.xlu0 %2390, %v43_v28   ;;  %106 = vperm.xlu1 %2391, %v44_v29   ;;  %v46_v37 = vld [vmem:[%s3416_s1 + $0x48] sm:$0xff]  ;;  %v291_v38 = vld [vmem:[%s3417_s2 + $0xc0] sm:$0xff]  ;;  %v64_v43 = vld [vmem:[%s3416_s1 + $0xd8] sm:$0xff] }
  0x3a   :  { %v292_v39 = vld [vmem:[%s3417_s2 + $0xc8] sm:$0xff]  ;;  %v275_v40 = vld [vmem:[%s3417_s2 + $0x40] sm:$0xff]  ;;  %v47_v44 = vld [vmem:[%s3416_s1 + $0x50] sm:$0xff] }
  0x3b   :  { %v276_v41 = vld [vmem:[%s3417_s2 + $0x48] sm:$0xff]  ;;  %v48_v45 = vld [vmem:[%s3416_s1 + $0x58] sm:$0xff]  ;;  %v293_v46 = vld [vmem:[%s3417_s2 + $0xd0] sm:$0xff] }
  0x3c   :  { %v294_v47 = vld [vmem:[%s3417_s2 + $0xd8] sm:$0xff]  ;;  %v277_v48 = vld [vmem:[%s3417_s2 + $0x50] sm:$0xff]  ;;  %v65_v50 = vld [vmem:[%s3416_s1 + $0xe0] sm:$0xff] }
  0x3d   :  { %411 = vperm.xlu0 %2390, %v289_v30   ;;  %416 = vperm.xlu1 %2391, %v290_v31   ;;  %v278_v49 = vld [vmem:[%s3417_s2 + $0x58] sm:$0xff]  ;;  %v66_v51 = vld [vmem:[%s3416_s1 + $0xe8] sm:$0xff]  ;;  %v49_v52 = vld [vmem:[%s3416_s1 + $0x60] sm:$0xff] }
  0x3e   :  { %v50_v53 = vld [vmem:[%s3416_s1 + $0x68] sm:$0xff]  ;;  %v295_v54 = vld [vmem:[%s3417_s2 + $0xe0] sm:$0xff]  ;;  %v67_v58 = vld [vmem:[%s3416_s1 + $0xf0] sm:$0xff] }
  0x3f   :  { %v296_v55 = vld [vmem:[%s3417_s2 + $0xe8] sm:$0xff]  ;;  %v279_v56 = vld [vmem:[%s3417_s2 + $0x60] sm:$0xff]  ;;  %v68_v59 = vld [vmem:[%s3416_s1 + $0xf8] sm:$0xff] }
  0x40   :  { %v280_v57 = vld [vmem:[%s3417_s2 + $0x68] sm:$0xff]  ;;  %v51_v60 = vld [vmem:[%s3416_s1 + $0x70] sm:$0xff]  ;;  %v52_v61 = vld [vmem:[%s3416_s1 + $0x78] sm:$0xff] }
  0x41   :  { %331 = vperm.xlu0 %2390, %v273_v32   ;;  %336 = vperm.xlu1 %2391, %v274_v33   ;;  %v297_v62 = vld [vmem:[%s3417_s2 + $0xf0] sm:$0xff]  ;;  %v298_v63 = vld [vmem:[%s3417_s2 + $0xf8] sm:$0xff]  ;;  %v619_v2 = vld [vmem:[%s3419_s4 + $0x80] sm:$0xff] }
  0x42   :  { %v281_v0 = vld [vmem:[%s3417_s2 + $0x70] sm:$0xff]  ;;  %v282_v1 = vld [vmem:[%s3417_s2 + $0x78] sm:$0xff]  ;;  %v620_v3 = vld [vmem:[%s3419_s4 + $0x88] sm:$0xff] }
  0x43   :  { %v603_v6 = vld [vmem:[%s3419_s4] sm:$0xff]  ;;  %v604_v7 = vld [vmem:[%s3419_s4 + $0x8] sm:$0xff]  ;;  %v621_v11 = vld [vmem:[%s3419_s4 + $0x90] sm:$0xff] }
  0x44   :  { %v2778_v8 = vld [vmem:[%s3415_s0] ss:$0 sm:$0xff]  ;;  %v622_v12 = vld [vmem:[%s3419_s4 + $0x98] sm:$0xff]  ;;  %v2394_v13 = vld [vmem:[%s3418_s3 + $0x4] ss:$8 sps:$4 sm:$0xff]  }
  0x45   :  { %191 = vperm.xlu0 %2390, %v61_v34   ;;  %196 = vperm.xlu1 %2391, %v62_v35   ;;  %v605_v20 = vld [vmem:[%s3419_s4 + $0x10] sm:$0xff]  ;;  %v606_v21 = vld [vmem:[%s3419_s4 + $0x18] sm:$0xff]  ;;  %v623_v31 = vld [vmem:[%s3419_s4 + $0xa0] sm:$0xff] }
  0x46   :  { %987 = vmatprep.mubr.bf16.mxu0 %v2394_v13  ;;  %v624_v32 = vld [vmem:[%s3419_s4 + $0xa8] sm:$0xff] }
  0x47   :  { %v612_v13 = vld [vmem:[%s3419_s4 + $0x48] sm:$0xff] }
  0x49   :  { %111 = vperm.xlu0 %2390, %v45_v36   ;;  %116 = vperm.xlu1 %2391, %v46_v37  }
  0x4d   :  { %421 = vperm.xlu0 %2390, %v291_v38   ;;  %426 = vperm.xlu1 %2391, %v292_v39  }
  0x51   :  { %341 = vperm.xlu0 %2390, %v275_v40   ;;  %346 = vperm.xlu1 %2391, %v276_v41   ;;  %v607_v40 = vld [vmem:[%s3419_s4 + $0x20] sm:$0xff]  ;;  %v608_v41 = vld [vmem:[%s3419_s4 + $0x28] sm:$0xff] }
  0x55   :  { %201 = vperm.xlu0 %2390, %v63_v42   ;;  %206 = vperm.xlu1 %2391, %v64_v43  }
  0x59   :  { %121 = vperm.xlu0 %2390, %v47_v44   ;;  %126 = vperm.xlu1 %2391, %v48_v45  }
  0x5d   :  { %431 = vperm.xlu0 %2390, %v293_v46   ;;  %436 = vperm.xlu1 %2391, %v294_v47   ;;  %v625_v46 = vld [vmem:[%s3419_s4 + $0xb0] sm:$0xff]  ;;  %v626_v47 = vld [vmem:[%s3419_s4 + $0xb8] sm:$0xff] }
  0x61   :  { %351 = vperm.xlu0 %2390, %v277_v48   ;;  %356 = vperm.xlu1 %2391, %v278_v49  }
  0x65   :  { %211 = vperm.xlu0 %2390, %v65_v50   ;;  %216 = vperm.xlu1 %2391, %v66_v51  }
  0x69   :  { %131 = vperm.xlu0 %2390, %v49_v52   ;;  %136 = vperm.xlu1 %2391, %v50_v53  }
  0x6d   :  { %441 = vperm.xlu0 %2390, %v295_v54   ;;  %446 = vperm.xlu1 %2391, %v296_v55   ;;  %v609_v54 = vld [vmem:[%s3419_s4 + $0x30] sm:$0xff] }
  0x71   :  { %361 = vperm.xlu0 %2390, %v279_v56   ;;  %366 = vperm.xlu1 %2391, %v280_v57  }
  0x75   :  { %221 = vperm.xlu0 %2390, %v67_v58   ;;  %226 = vperm.xlu1 %2391, %v68_v59   ;;  %v610_v59 = vld [vmem:[%s3419_s4 + $0x38] sm:$0xff] }
  0x79   :  { %141 = vperm.xlu0 %2390, %v51_v60   ;;  %146 = vperm.xlu1 %2391, %v52_v61  }
  0x7d   :  { %451 = vperm.xlu0 %2390, %v297_v62   ;;  %456 = vperm.xlu1 %2391, %v298_v63  }
  0x81   :  { %371 = vperm.xlu0 %2390, %v281_v0   ;;  %376 = vperm.xlu1 %2391, %v282_v1  }
  0x84   :  { %v152_v4 = vpop.permute.xlu0 %151  ;;  %v72_v5 = vpop.permute.xlu1 %71 }
  0x85   :  { %717 = vperm.xlu0 %2390, %v619_v2   ;;  %722 = vperm.xlu1 %2391, %v620_v3   ;;  %v251_v14 = vmul.f32 %v2778_v8, %v152_v4  ;;  %v235_v22 = vmul.f32 %v2778_v8, %v72_v5  ;;  %v627_v2 = vld [vmem:[%s3419_s4 + $0xc0] sm:$0xff]  ;;  %v628_v5 = vld [vmem:[%s3419_s4 + $0xc8] sm:$0xff] }
  0x88   :  { %v157_v9 = vpop.permute.xlu0 %156  ;;  %v77_v10 = vpop.permute.xlu1 %76 }
  0x89   :  { %637 = vperm.xlu0 %2390, %v603_v6   ;;  %642 = vperm.xlu1 %2391, %v604_v7   ;;  %v252_v15 = vmul.f32 %v2778_v8, %v157_v9  ;;  %v236_v23 = vmul.f32 %v2778_v8, %v77_v10 }
  0x8c   :  { %v382_v16 = vpop.permute.xlu0 %381  ;;  %v387_v17 = vpop.permute.xlu1 %386 }
  0x8d   :  { %v475_v18 = vadd.f32 %v382_v16, %v251_v14  ;;  %v476_v19 = vadd.f32 %v387_v17, %v252_v15  ;;  %727 = vperm.xlu0 %2390, %v621_v11   ;;  %732 = vperm.xlu1 %2391, %v622_v12   ;;  %v611_v12 = vld [vmem:[%s3419_s4 + $0x40] sm:$0xff]  ;;  %v629_v17 = vld [vmem:[%s3419_s4 + $0xd0] sm:$0xff] }
  0x8f   :  { %v507_v24 = vmul.f32 0.01, %v475_v18  ;;  %v508_v25 = vmul.f32 0.01, %v476_v19 }
  0x90   :  { %v302_v26 = vpop.permute.xlu0 %301  ;;  %v307_v27 = vpop.permute.xlu1 %306 }
  0x91   :  { %v459_v28 = vadd.f32 %v302_v26, %v235_v22  ;;  %v460_v29 = vadd.f32 %v307_v27, %v236_v23  ;;  %647 = vperm.xlu0 %2390, %v605_v20   ;;  %652 = vperm.xlu1 %2391, %v606_v21   ;;  %v539_v30 = vmax.f32 %v475_v18, %v507_v24  ;;  %v630_v20 = vld [vmem:[%s3419_s4 + $0xd8] sm:$0xff] }
  0x92   :  { %v540_v33 = vmax.f32 %v476_v19, %v508_v25  ;;  %v613_v25 = vld [vmem:[%s3419_s4 + $0x50] sm:$0xff] }
  0x93   :  { %v491_v34 = vmul.f32 0.01, %v459_v28  ;;  %v492_v35 = vmul.f32 0.01, %v460_v29 }
  0x94   :  { %v162_v36 = vpop.permute.xlu0 %161  ;;  %v167_v37 = vpop.permute.xlu1 %166  ;;  %v595_v38 = vpack.c.bf16 %v540_v33, %v539_v30  ;;  %v614_v30 = vld [vmem:[%s3419_s4 + $0x58] sm:$0xff] }
  0x95   :  { %737 = vperm.xlu0 %2390, %v623_v31   ;;  %742 = vperm.xlu1 %2391, %v624_v32   ;;  %v523_v39 = vmax.f32 %v459_v28, %v491_v34  ;;  %v524_v42 = vmax.f32 %v460_v29, %v492_v35  ;;  %v253_v48 = vmul.f32 %v2778_v8, %v162_v36 }
  0x96   :  { %2164 = vmatprep.subr.bf16.mxu0 %v595_v38  ;;  %v254_v49 = vmul.f32 %v2778_v8, %v167_v37  ;;  %v631_v37 = vld [vmem:[%s3419_s4 + $0xe0] sm:$0xff] }
  0x97   :  { %v587_v45 = vpack.c.bf16 %v524_v42, %v523_v39 }
  0x98   :  { %v82_v43 = vpop.permute.xlu0 %81  ;;  %v87_v44 = vpop.permute.xlu1 %86 }
  0x99   :  { %657 = vperm.xlu0 %2390, %v607_v40   ;;  %662 = vperm.xlu1 %2391, %v608_v41   ;;  %v237_v55 = vmul.f32 %v2778_v8, %v82_v43  ;;  %v238_v56 = vmul.f32 %v2778_v8, %v87_v44  ;;  %v632_v40 = vld [vmem:[%s3419_s4 + $0xe8] sm:$0xff] }
  0x9a   :  { %2165 = vmatpush3.bf16.msra.mxu0 %v587_v45 }
  0x9c   :  { %v392_v50 = vpop.permute.xlu0 %391  ;;  %v397_v51 = vpop.permute.xlu1 %396 }
  0x9d   :  { %v477_v52 = vadd.f32 %v392_v50, %v253_v48  ;;  %v478_v53 = vadd.f32 %v397_v51, %v254_v49  ;;  %747 = vperm.xlu0 %2390, %v625_v46   ;;  %752 = vperm.xlu1 %2391, %v626_v47   ;;  %v615_v46 = vld [vmem:[%s3419_s4 + $0x60] sm:$0xff]  ;;  %v616_v47 = vld [vmem:[%s3419_s4 + $0x68] sm:$0xff]  ;;  %v633_v51 = vld [vmem:[%s3419_s4 + $0xf0] sm:$0xff] }
  0x9f   :  { %v509_v57 = vmul.f32 0.01, %v477_v52  ;;  %v510_v58 = vmul.f32 0.01, %v478_v53 }
  0xa0   :  { %v312_v60 = vpop.permute.xlu0 %311  ;;  %v317_v61 = vpop.permute.xlu1 %316 }
  0xa1   :  { %v541_v62 = vmax.f32 %v477_v52, %v509_v57  ;;  %v542_v63 = vmax.f32 %v478_v53, %v510_v58  ;;  %v461_v0 = vadd.f32 %v312_v60, %v237_v55  ;;  %v462_v1 = vadd.f32 %v317_v61, %v238_v56  ;;  %667 = vperm.xlu0 %2390, %v609_v54   ;;  %v634_v54 = vld [vmem:[%s3419_s4 + $0xf8] sm:$0xff] }
  0xa2   :  { %672 = vperm.xlu1 %2391, %v610_v59   ;;  %v617_v59 = vld [vmem:[%s3419_s4 + $0x70] sm:$0xff] }
  0xa3   :  { %v493_v3 = vmul.f32 0.01, %v461_v0  ;;  %v494_v4 = vmul.f32 0.01, %v462_v1  ;;  %v596_v6 = vpack.c.bf16 %v542_v63, %v541_v62 }
  0xa4   :  { %v172_v7 = vpop.permute.xlu0 %171  ;;  %v177_v9 = vpop.permute.xlu1 %176 }
  0xa5   :  { %v525_v10 = vmax.f32 %v461_v0, %v493_v3  ;;  %v526_v11 = vmax.f32 %v462_v1, %v494_v4  ;;  %757 = vperm.xlu0 %2390, %v627_v2   ;;  %2166 = vmatprep.subr.bf16.mxu0 %v596_v6  ;;  %v255_v18 = vmul.f32 %v2778_v8, %v172_v7  ;;  %v618_v0 = vld [vmem:[%s3419_s4 + $0x78] sm:$0xff]  ;;  %v1228_v7 = vld [vmem:[%s3421_s6] sm:$0xff] }
  0xa6   :  { %762 = vperm.xlu1 %2391, %v628_v5   ;;  %v256_v19 = vmul.f32 %v2778_v8, %v177_v9 }
  0xa7   :  { %v588_v14 = vpack.c.bf16 %v526_v11, %v525_v10  ;;  %v1229_v11 = vld [vmem:[%s3421_s6 + $0x8] sm:$0xff] }
  0xa8   :  { %v92_v15 = vpop.permute.xlu0 %91  ;;  %v97_v16 = vpop.permute.xlu1 %96 }
  0xa9   :  { %677 = vperm.xlu0 %2390, %v611_v12   ;;  %2167 = vmatpush3.bf16.msra.mxu0 %v588_v14  ;;  %v239_v26 = vmul.f32 %v2778_v8, %v92_v15  ;;  %v240_v27 = vmul.f32 %v2778_v8, %v97_v16 }
  0xaa   :  { %682 = vperm.xlu1 %2391, %v612_v13  }
  0xac   :  { %v402_v21 = vpop.permute.xlu0 %401  ;;  %v407_v22 = vpop.permute.xlu1 %406 }
  0xad   :  { %v479_v23 = vadd.f32 %v402_v21, %v255_v18  ;;  %v480_v24 = vadd.f32 %v407_v22, %v256_v19  ;;  %767 = vperm.xlu0 %2390, %v629_v17   ;;  %v1230_v17 = vld [vmem:[%s3421_s6 + $0x10] sm:$0xff]  ;;  %v1231_v18 = vld [vmem:[%s3421_s6 + $0x18] sm:$0xff]  ;;  %v1232_v22 = vld [vmem:[%s3421_s6 + $0x20] sm:$0xff] }
  0xae   :  { %772 = vperm.xlu1 %2391, %v630_v20  }
  0xaf   :  { %v511_v28 = vmul.f32 0.01, %v479_v23  ;;  %v512_v29 = vmul.f32 0.01, %v480_v24 }
  0xb0   :  { %v322_v31 = vpop.permute.xlu0 %321  ;;  %v327_v32 = vpop.permute.xlu1 %326 }
  0xb1   :  { %v543_v33 = vmax.f32 %v479_v23, %v511_v28  ;;  %v544_v34 = vmax.f32 %v480_v24, %v512_v29  ;;  %v463_v35 = vadd.f32 %v322_v31, %v239_v26  ;;  %v464_v36 = vadd.f32 %v327_v32, %v240_v27  ;;  %687 = vperm.xlu0 %2390, %v613_v25   ;;  %v1233_v25 = vld [vmem:[%s3421_s6 + $0x28] sm:$0xff] }
  0xb2   :  { %692 = vperm.xlu1 %2391, %v614_v30   ;;  %v1234_v30 = vld [vmem:[%s3421_s6 + $0x30] sm:$0xff] }
  0xb3   :  { %v495_v38 = vmul.f32 0.01, %v463_v35  ;;  %v496_v39 = vmul.f32 0.01, %v464_v36  ;;  %v597_v41 = vpack.c.bf16 %v544_v34, %v543_v33 }
  0xb4   :  { %v182_v42 = vpop.permute.xlu0 %181  ;;  %v187_v43 = vpop.permute.xlu1 %186 }
  0xb5   :  { %v527_v44 = vmax.f32 %v463_v35, %v495_v38  ;;  %v528_v45 = vmax.f32 %v464_v36, %v496_v39  ;;  %777 = vperm.xlu0 %2390, %v631_v37   ;;  %2168 = vmatprep.subr.bf16.mxu0 %v597_v41  ;;  %v257_v52 = vmul.f32 %v2778_v8, %v182_v42  ;;  %v1235_v35 = vld [vmem:[%s3421_s6 + $0x38] sm:$0xff]  ;;  %v1236_v42 = vld [vmem:[%s3421_s6 + $0x40] sm:$0xff] }
  0xb6   :  { %782 = vperm.xlu1 %2391, %v632_v40   ;;  %v258_v53 = vmul.f32 %v2778_v8, %v187_v43 }
  0xb7   :  { %v589_v48 = vpack.c.bf16 %v528_v45, %v527_v44  ;;  %v1237_v45 = vld [vmem:[%s3421_s6 + $0x48] sm:$0xff] }
  0xb8   :  { %v102_v49 = vpop.permute.xlu0 %101  ;;  %v107_v50 = vpop.permute.xlu1 %106 }
  0xb9   :  { %697 = vperm.xlu0 %2390, %v615_v46   ;;  %2169 = vmatpush3.bf16.msra.mxu0 %v589_v48  ;;  %v241_v60 = vmul.f32 %v2778_v8, %v102_v49  ;;  %v242_v61 = vmul.f32 %v2778_v8, %v107_v50 }
  0xba   :  { %702 = vperm.xlu1 %2391, %v616_v47  }
  0xbc   :  { %v412_v55 = vpop.permute.xlu0 %411  ;;  %v417_v56 = vpop.permute.xlu1 %416 }
  0xbd   :  { %v481_v57 = vadd.f32 %v412_v55, %v257_v52  ;;  %v482_v58 = vadd.f32 %v417_v56, %v258_v53  ;;  %787 = vperm.xlu0 %2390, %v633_v51   ;;  %v1238_v51 = vld [vmem:[%s3421_s6 + $0x50] sm:$0xff]  ;;  %v1239_v52 = vld [vmem:[%s3421_s6 + $0x58] sm:$0xff]  ;;  %v1240_v56 = vld [vmem:[%s3421_s6 + $0x60] sm:$0xff] }
  0xbe   :  { %792 = vperm.xlu1 %2391, %v634_v54  }
  0xbf   :  { %v513_v62 = vmul.f32 0.01, %v481_v57  ;;  %v514_v63 = vmul.f32 0.01, %v482_v58 }
  0xc0   :  { %v332_v1 = vpop.permute.xlu0 %331  ;;  %v337_v2 = vpop.permute.xlu1 %336 }
  0xc1   :  { %v545_v3 = vmax.f32 %v481_v57, %v513_v62  ;;  %v546_v4 = vmax.f32 %v482_v58, %v514_v63  ;;  %v465_v5 = vadd.f32 %v332_v1, %v241_v60  ;;  %v466_v6 = vadd.f32 %v337_v2, %v242_v61  ;;  %707 = vperm.xlu0 %2390, %v617_v59   ;;  %v1241_v59 = vld [vmem:[%s3421_s6 + $0x68] sm:$0xff] }
  0xc2   :  { %712 = vperm.xlu1 %2391, %v618_v0   ;;  %v1242_v0 = vld [vmem:[%s3421_s6 + $0x70] sm:$0xff] }
  0xc3   :  { %v497_v9 = vmul.f32 0.01, %v465_v5  ;;  %v498_v10 = vmul.f32 0.01, %v466_v6  ;;  %v598_v12 = vpack.c.bf16 %v546_v4, %v545_v3 }
  0xc4   :  { %v192_v13 = vpop.permute.xlu0 %191  ;;  %v197_v14 = vpop.permute.xlu1 %196 }
  0xc5   :  { %v529_v15 = vmax.f32 %v465_v5, %v497_v9  ;;  %v530_v16 = vmax.f32 %v466_v6, %v498_v10  ;;  %1262 = vperm.xlu0 %2390, %v1228_v7   ;;  %2170 = vmatprep.subr.bf16.mxu0 %v598_v12  ;;  %v259_v23 = vmul.f32 %v2778_v8, %v192_v13  ;;  %v1243_v5 = vld [vmem:[%s3421_s6 + $0x78] sm:$0xff]  ;;  %v1244_v13 = vld [vmem:[%s3421_s6 + $0x80] sm:$0xff] }
  0xc6   :  { %1267 = vperm.xlu1 %2391, %v1229_v11   ;;  %v260_v24 = vmul.f32 %v2778_v8, %v197_v14 }
  0xc7   :  { %v590_v19 = vpack.c.bf16 %v530_v16, %v529_v15  ;;  %v1245_v16 = vld [vmem:[%s3421_s6 + $0x88] sm:$0xff] }
  0xc8   :  { %v112_v20 = vpop.permute.xlu0 %111  ;;  %v117_v21 = vpop.permute.xlu1 %116 }
  0xc9   :  { %1272 = vperm.xlu0 %2390, %v1230_v17   ;;  %2171 = vmatpush3.bf16.msra.mxu0 %v590_v19  ;;  %v243_v31 = vmul.f32 %v2778_v8, %v112_v20  ;;  %v244_v32 = vmul.f32 %v2778_v8, %v117_v21 }
  0xca   :  { %1277 = vperm.xlu1 %2391, %v1231_v18  }
  0xcc   :  { %v422_v26 = vpop.permute.xlu0 %421  ;;  %v427_v27 = vpop.permute.xlu1 %426 }
  0xcd   :  { %v483_v28 = vadd.f32 %v422_v26, %v259_v23  ;;  %v484_v29 = vadd.f32 %v427_v27, %v260_v24  ;;  %1282 = vperm.xlu0 %2390, %v1232_v22   ;;  %v1246_v22 = vld [vmem:[%s3421_s6 + $0x90] sm:$0xff]  ;;  %v1247_v23 = vld [vmem:[%s3421_s6 + $0x98] sm:$0xff]  ;;  %v1248_v27 = vld [vmem:[%s3421_s6 + $0xa0] sm:$0xff] }
  0xce   :  { %1287 = vperm.xlu1 %2391, %v1233_v25  }
  0xcf   :  { %v515_v33 = vmul.f32 0.01, %v483_v28  ;;  %v516_v34 = vmul.f32 0.01, %v484_v29 }
  0xd0   :  { %v342_v36 = vpop.permute.xlu0 %341  ;;  %v347_v37 = vpop.permute.xlu1 %346 }
  0xd1   :  { %v547_v38 = vmax.f32 %v483_v28, %v515_v33  ;;  %v548_v39 = vmax.f32 %v484_v29, %v516_v34  ;;  %v467_v40 = vadd.f32 %v342_v36, %v243_v31  ;;  %v468_v41 = vadd.f32 %v347_v37, %v244_v32  ;;  %1292 = vperm.xlu0 %2390, %v1234_v30   ;;  %v1249_v30 = vld [vmem:[%s3421_s6 + $0xa8] sm:$0xff] }
  0xd2   :  { %1297 = vperm.xlu1 %2391, %v1235_v35   ;;  %v1250_v35 = vld [vmem:[%s3421_s6 + $0xb0] sm:$0xff] }
  0xd3   :  { %v499_v43 = vmul.f32 0.01, %v467_v40  ;;  %v500_v44 = vmul.f32 0.01, %v468_v41  ;;  %v599_v46 = vpack.c.bf16 %v548_v39, %v547_v38 }
  0xd4   :  { %v202_v47 = vpop.permute.xlu0 %201  ;;  %v207_v48 = vpop.permute.xlu1 %206 }
  0xd5   :  { %v531_v49 = vmax.f32 %v467_v40, %v499_v43  ;;  %v532_v50 = vmax.f32 %v468_v41, %v500_v44  ;;  %1302 = vperm.xlu0 %2390, %v1236_v42   ;;  %2172 = vmatprep.subr.bf16.mxu0 %v599_v46  ;;  %v261_v57 = vmul.f32 %v2778_v8, %v202_v47  ;;  %v1805_v40 = vld [vmem:[%s3422_s7] sm:$0xff]  ;;  %v1806_v47 = vld [vmem:[%s3422_s7 + $0x8] sm:$0xff] }
  0xd6   :  { %1307 = vperm.xlu1 %2391, %v1237_v45   ;;  %v262_v58 = vmul.f32 %v2778_v8, %v207_v48 }
  0xd7   :  { %v591_v53 = vpack.c.bf16 %v532_v50, %v531_v49  ;;  %v1807_v50 = vld [vmem:[%s3422_s7 + $0x10] sm:$0xff] }
  0xd8   :  { %v122_v54 = vpop.permute.xlu0 %121  ;;  %v127_v55 = vpop.permute.xlu1 %126 }
  0xd9   :  { %1312 = vperm.xlu0 %2390, %v1238_v51   ;;  %2173 = vmatpush3.bf16.msra.mxu0 %v591_v53  ;;  %v245_v1 = vmul.f32 %v2778_v8, %v122_v54  ;;  %v246_v2 = vmul.f32 %v2778_v8, %v127_v55 }
  0xda   :  { %1317 = vperm.xlu1 %2391, %v1239_v52  }
  0xdc   :  { %v432_v60 = vpop.permute.xlu0 %431  ;;  %v437_v61 = vpop.permute.xlu1 %436 }
  0xdd   :  { %v485_v62 = vadd.f32 %v432_v60, %v261_v57  ;;  %v486_v63 = vadd.f32 %v437_v61, %v262_v58  ;;  %1322 = vperm.xlu0 %2390, %v1240_v56   ;;  %v1808_v56 = vld [vmem:[%s3422_s7 + $0x18] sm:$0xff]  ;;  %v1809_v57 = vld [vmem:[%s3422_s7 + $0x20] sm:$0xff]  ;;  %v1810_v61 = vld [vmem:[%s3422_s7 + $0x28] sm:$0xff] }
  0xde   :  { %1327 = vperm.xlu1 %2391, %v1241_v59  }
  0xdf   :  { %v517_v3 = vmul.f32 0.01, %v485_v62  ;;  %v518_v4 = vmul.f32 0.01, %v486_v63 }
  0xe0   :  { %v352_v6 = vpop.permute.xlu0 %351  ;;  %v357_v7 = vpop.permute.xlu1 %356 }
  0xe1   :  { %v549_v9 = vmax.f32 %v485_v62, %v517_v3  ;;  %v550_v10 = vmax.f32 %v486_v63, %v518_v4  ;;  %v469_v11 = vadd.f32 %v352_v6, %v245_v1  ;;  %v470_v12 = vadd.f32 %v357_v7, %v246_v2  ;;  %1332 = vperm.xlu0 %2390, %v1242_v0   ;;  %v1811_v0 = vld [vmem:[%s3422_s7 + $0x30] sm:$0xff] }
  0xe2   :  { %1337 = vperm.xlu1 %2391, %v1243_v5   ;;  %v1812_v5 = vld [vmem:[%s3422_s7 + $0x38] sm:$0xff] }
  0xe3   :  { %v501_v14 = vmul.f32 0.01, %v469_v11  ;;  %v502_v15 = vmul.f32 0.01, %v470_v12  ;;  %v600_v17 = vpack.c.bf16 %v550_v10, %v549_v9 }
  0xe4   :  { %v212_v18 = vpop.permute.xlu0 %211  ;;  %v217_v19 = vpop.permute.xlu1 %216 }
  0xe5   :  { %v533_v20 = vmax.f32 %v469_v11, %v501_v14  ;;  %v534_v21 = vmax.f32 %v470_v12, %v502_v15  ;;  %1342 = vperm.xlu0 %2390, %v1244_v13   ;;  %2174 = vmatprep.subr.bf16.mxu0 %v600_v17  ;;  %v263_v28 = vmul.f32 %v2778_v8, %v212_v18  ;;  %v1813_v11 = vld [vmem:[%s3422_s7 + $0x40] sm:$0xff]  ;;  %v1814_v18 = vld [vmem:[%s3422_s7 + $0x48] sm:$0xff] }
  0xe6   :  { %1347 = vperm.xlu1 %2391, %v1245_v16   ;;  %v264_v29 = vmul.f32 %v2778_v8, %v217_v19 }
  0xe7   :  { %v592_v24 = vpack.c.bf16 %v534_v21, %v533_v20  ;;  %v1815_v20 = vld [vmem:[%s3422_s7 + $0x50] sm:$0xff] }
  0xe8   :  { %v132_v25 = vpop.permute.xlu0 %131  ;;  %v137_v26 = vpop.permute.xlu1 %136 }
  0xe9   :  { %1352 = vperm.xlu0 %2390, %v1246_v22   ;;  %2175 = vmatpush3.bf16.msra.mxu0 %v592_v24  ;;  %v247_v36 = vmul.f32 %v2778_v8, %v132_v25  ;;  %v248_v37 = vmul.f32 %v2778_v8, %v137_v26  ;;  %v1816_v24 = vld [vmem:[%s3422_s7 + $0x58] sm:$0xff]  ;;  %v1817_v25 = vld [vmem:[%s3422_s7 + $0x60] sm:$0xff] }
  0xea   :  { %1357 = vperm.xlu1 %2391, %v1247_v23  }
  0xec   :  { %v442_v31 = vpop.permute.xlu0 %441  ;;  %v447_v32 = vpop.permute.xlu1 %446 }
  0xed   :  { %v487_v33 = vadd.f32 %v442_v31, %v263_v28  ;;  %v488_v34 = vadd.f32 %v447_v32, %v264_v29  ;;  %1362 = vperm.xlu0 %2390, %v1248_v27   ;;  %v2392_v27 = vld [vmem:[%s3418_s3] ss:$8 sps:$4 sm:$0xff]   ;;  %v2395_v28 = vld [vmem:[%s3418_s3 + $0x14] ss:$8 sps:$4 sm:$0xff]  }
  0xee   :  { %1367 = vperm.xlu1 %2391, %v1249_v30   ;;  %v1818_v29 = vld [vmem:[%s3422_s7 + $0x68] sm:$0xff]  ;;  %v1819_v30 = vld [vmem:[%s3422_s7 + $0x70] sm:$0xff]  ;;  %v1820_v31 = vld [vmem:[%s3422_s7 + $0x78] sm:$0xff] }
  0xef   :  { %v519_v38 = vmul.f32 0.01, %v487_v33  ;;  %v520_v39 = vmul.f32 0.01, %v488_v34  ;;  %v1821_v32 = vld [vmem:[%s3422_s7 + $0x80] sm:$0xff] }
  0xf0   :  { %v362_v41 = vpop.permute.xlu0 %361  ;;  %v367_v42 = vpop.permute.xlu1 %366 }
  0xf1   :  { %v551_v43 = vmax.f32 %v487_v33, %v519_v38  ;;  %v552_v44 = vmax.f32 %v488_v34, %v520_v39  ;;  %v471_v45 = vadd.f32 %v362_v41, %v247_v36  ;;  %v472_v46 = vadd.f32 %v367_v42, %v248_v37  ;;  %1372 = vperm.xlu0 %2390, %v1250_v35   ;;  %v2397_v33 = vld [vmem:[%s3418_s3 + $0x10] ss:$8 sps:$4 sm:$0xff]   ;;  %v2398_v34 = vld [vmem:[%s3418_s3 + $0x24] ss:$8 sps:$4 sm:$0xff]   ;;  %v2400_v39 = vld [vmem:[%s3418_s3 + $0x20] ss:$8 sps:$4 sm:$0xff]  }
  0xf2   :  { %1839 = vperm.xlu1 %2391, %v1805_v40   ;;  %v1822_v35 = vld [vmem:[%s3422_s7 + $0x88] sm:$0xff]  ;;  %v1823_v36 = vld [vmem:[%s3422_s7 + $0x90] sm:$0xff]  ;;  %v1824_v37 = vld [vmem:[%s3422_s7 + $0x98] sm:$0xff] }
  0xf3   :  { %v503_v48 = vmul.f32 0.01, %v471_v45  ;;  %v504_v49 = vmul.f32 0.01, %v472_v46  ;;  %v601_v51 = vpack.c.bf16 %v552_v44, %v551_v43  ;;  %v1251_v38 = vld [vmem:[%s3421_s6 + $0xb8] sm:$0xff]  ;;  %v1825_v41 = vld [vmem:[%s3422_s7 + $0xa0] sm:$0xff] }
  0xf4   :  { %v222_v52 = vpop.permute.xlu0 %221  ;;  %v227_v53 = vpop.permute.xlu1 %226  ;;  %v2401_v40 = vld [vmem:[%s3418_s3 + $0x34] ss:$8 sps:$4 sm:$0xff]   ;;  %v1252_v42 = vld [vmem:[%s3421_s6 + $0xc0] sm:$0xff]  ;;  %v1826_v43 = vld [vmem:[%s3422_s7 + $0xa8] sm:$0xff] }
  0xf5   :  { %v535_v54 = vmax.f32 %v471_v45, %v503_v48  ;;  %v536_v55 = vmax.f32 %v472_v46, %v504_v49  ;;  %1844 = vperm.xlu0 %2390, %v1806_v47   ;;  %2176 = vmatprep.subr.bf16.mxu0 %v601_v51  ;;  %v265_v62 = vmul.f32 %v2778_v8, %v222_v52  ;;  %v1253_v44 = vld [vmem:[%s3421_s6 + $0xc8] sm:$0xff]  ;;  %v2403_v45 = vld [vmem:[%s3418_s3 + $0x30] ss:$8 sps:$4 sm:$0xff]   ;;  %v2407_v52 = vld [vmem:[%s3418_s3 + $0x54] ss:$8 sps:$4 sm:$0xff]  }
  0xf6   :  { %1849 = vperm.xlu1 %2391, %v1807_v50   ;;  %v266_v63 = vmul.f32 %v2778_v8, %v227_v53  ;;  %v2404_v46 = vld [vmem:[%s3418_s3 + $0x44] ss:$8 sps:$4 sm:$0xff]   ;;  %v1827_v47 = vld [vmem:[%s3422_s7 + $0xb0] sm:$0xff]  ;;  %v1828_v49 = vld [vmem:[%s3422_s7 + $0xb8] sm:$0xff] }
  0xf7   :  { %v593_v58 = vpack.c.bf16 %v536_v55, %v535_v54  ;;  %v1254_v48 = vld [vmem:[%s3421_s6 + $0xd0] sm:$0xff]  ;;  %v1255_v50 = vld [vmem:[%s3421_s6 + $0xd8] sm:$0xff]  ;;  %v2406_v51 = vld [vmem:[%s3418_s3 + $0x40] ss:$8 sps:$4 sm:$0xff]  }
  0xf8   :  { %v142_v59 = vpop.permute.xlu0 %141  ;;  %v147_v60 = vpop.permute.xlu1 %146  ;;  %v1829_v53 = vld [vmem:[%s3422_s7 + $0xc0] sm:$0xff]  ;;  %v1830_v55 = vld [vmem:[%s3422_s7 + $0xc8] sm:$0xff] }
  0xf9   :  { %1854 = vperm.xlu0 %2390, %v1808_v56   ;;  %2177 = vmatpush3.bf16.msra.mxu0 %v593_v58  ;;  %v249_v6 = vmul.f32 %v2778_v8, %v142_v59  ;;  %v250_v7 = vmul.f32 %v2778_v8, %v147_v60  ;;  %v1256_v54 = vld [vmem:[%s3421_s6 + $0xe0] sm:$0xff]  ;;  %v1257_v56 = vld [vmem:[%s3421_s6 + $0xe8] sm:$0xff]  ;;  %v1831_v59 = vld [vmem:[%s3422_s7 + $0xd0] sm:$0xff] }
  0xfa   :  { %1859 = vperm.xlu1 %2391, %v1809_v57   ;;  %v2409_v57 = vld [vmem:[%s3418_s3 + $0x50] ss:$8 sps:$4 sm:$0xff]   ;;  %v2410_v58 = vld [vmem:[%s3418_s3 + $0x64] ss:$8 sps:$4 sm:$0xff]  }
  0xfb   :  { %v1258_v60 = vld [vmem:[%s3421_s6 + $0xf0] sm:$0xff] }
  0xfc   :  { %v452_v1 = vpop.permute.xlu0 %451  ;;  %v457_v2 = vpop.permute.xlu1 %456 }
  0xfd   :  { %v489_v3 = vadd.f32 %v452_v1, %v265_v62  ;;  %v490_v4 = vadd.f32 %v457_v2, %v266_v63  ;;  %1864 = vperm.xlu0 %2390, %v1810_v61   ;;  %v1832_v61 = vld [vmem:[%s3422_s7 + $0xd8] sm:$0xff]  ;;  %v2412_v63 = vld [vmem:[%s3418_s3 + $0x60] ss:$8 sps:$4 sm:$0xff]  }
  0xfe   :  { %1869 = vperm.xlu1 %2391, %v1811_v0   ;;  %v1259_v62 = vld [vmem:[%s3421_s6 + $0xf8] sm:$0xff]  ;;  %v1833_v1 = vld [vmem:[%s3422_s7 + $0xe0] sm:$0xff]  ;;  %v1834_v2 = vld [vmem:[%s3422_s7 + $0xe8] sm:$0xff] }
  0xff   :  { %v521_v9 = vmul.f32 0.01, %v489_v3  ;;  %v522_v10 = vmul.f32 0.01, %v490_v4  ;;  %v2413_v0 = vld [vmem:[%s3418_s3 + $0x74] ss:$8 sps:$4 sm:$0xff]  }
 0x100   :  { %v372_v12 = vpop.permute.xlu0 %371  ;;  %v377_v13 = vpop.permute.xlu1 %376 }
 0x101   :  { %v553_v14 = vmax.f32 %v489_v3, %v521_v9  ;;  %v554_v15 = vmax.f32 %v490_v4, %v522_v10  ;;  %v473_v16 = vadd.f32 %v372_v12, %v249_v6  ;;  %v474_v17 = vadd.f32 %v377_v13, %v250_v7  ;;  %1874 = vperm.xlu0 %2390, %v1812_v5   ;;  %v1835_v3 = vld [vmem:[%s3422_s7 + $0xf0] sm:$0xff]  ;;  %v1836_v4 = vld [vmem:[%s3422_s7 + $0xf8] sm:$0xff]  ;;  %v2416_v6 = vld [vmem:[%s3418_s3 + $0x84] ss:$8 sps:$4 sm:$0xff]  }
 0x102   :  { %1879 = vperm.xlu1 %2391, %v1813_v11   ;;  %v2415_v5 = vld [vmem:[%s3418_s3 + $0x70] ss:$8 sps:$4 sm:$0xff]   ;;  %v2066_v7 = vld [vmem:[#allocation2] sm:$0x1]  ;;  %v2419_v10 = vld [vmem:[%s3418_s3 + $0x94] ss:$8 sps:$4 sm:$0xff]  }
 0x103   :  { %v505_v19 = vmul.f32 0.01, %v473_v16  ;;  %v506_v8 = vmul.f32 0.01, %v474_v17  ;;  %v602_v21 = vpack.c.bf16 %v554_v15, %v553_v14  ;;  %v2418_v9 = vld [vmem:[%s3418_s3 + $0x80] ss:$8 sps:$4 sm:$0xff]  }
 0x104   :  { %v2421_v11 = vld [vmem:[%s3418_s3 + $0x90] ss:$8 sps:$4 sm:$0xff]   ;;  %v2422_v12 = vld [vmem:[%s3418_s3 + $0xa4] ss:$8 sps:$4 sm:$0xff]   ;;  %v2424_v13 = vld [vmem:[%s3418_s3 + $0xa0] ss:$8 sps:$4 sm:$0xff]  }
 0x105   :  { %v537_v22 = vmax.f32 %v473_v16, %v505_v19  ;;  %v538_v23 = vmax.f32 %v474_v17, %v506_v8  ;;  %1884 = vperm.xlu0 %2390, %v1814_v18   ;;  %2178 = vmatprep.subr.bf16.mxu0 %v602_v21  ;;  %v2425_v14 = vld [vmem:[%s3418_s3 + $0xb4] ss:$8 sps:$4 sm:$0xff]   ;;  %v2427_v15 = vld [vmem:[%s3418_s3 + $0xb0] ss:$8 sps:$4 sm:$0xff]   ;;  %v2428_v16 = vld [vmem:[%s3418_s3 + $0xc4] ss:$8 sps:$4 sm:$0xff]  }
 0x106   :  { %1889 = vperm.xlu1 %2391, %v1815_v20   ;;  %v2430_v17 = vld [vmem:[%s3418_s3 + $0xc0] ss:$8 sps:$4 sm:$0xff]   ;;  %v2431_v18 = vld [vmem:[%s3418_s3 + $0xd4] ss:$8 sps:$4 sm:$0xff]   ;;  %v2433_v19 = vld [vmem:[%s3418_s3 + $0xd0] ss:$8 sps:$4 sm:$0xff]  }
 0x107   :  { %v594_v26 = vpack.c.bf16 %v538_v23, %v537_v22  ;;  %v2434_v8 = vld [vmem:[%s3418_s3 + $0xe4] ss:$8 sps:$4 sm:$0xff]   ;;  %v2436_v20 = vld [vmem:[%s3418_s3 + $0xe0] ss:$8 sps:$4 sm:$0xff]   ;;  %v2437_v21 = vld [vmem:[%s3418_s3 + $0xf4] ss:$8 sps:$4 sm:$0xff]   ;;  %v3184_v23 = vpop.permute.xlu0 %717 }
 0x108   :  { %v2439_v22 = vld [vmem:[%s3418_s3 + $0xf0] ss:$8 sps:$4 sm:$0xff]  }
 0x109   :  { %1894 = vperm.xlu0 %2390, %v1816_v24   ;;  %2179 = vmatpush3.bf16.msra.mxu0 %v594_v26  ;;  %v3186_v24 = vpop.permute.xlu1 %722 }
 0x10a   :  { %1899 = vperm.xlu1 %2391, %v1817_v25  }
 0x10b   :  { %v638_v25 = vpop.permute.xlu0 %637 }
 0x10c   :  { %988 = vmatmul.mubr.bf16.vlgmr.msra.gmra.mrb[0].mxu0 %v2392_v27 }
 0x10d   :  { %1904 = vperm.xlu0 %2390, %v1818_v29   ;;  %995 = vmatprep.mubr.bf16.mxu0 %v2395_v28  ;;  %v643_v26 = vpop.permute.xlu1 %642 }
 0x10e   :  { %1909 = vperm.xlu1 %2391, %v1819_v30  }
 0x10f   :  { %v3188_v27 = vpop.permute.xlu0 %727 }
 0x111   :  { %1914 = vperm.xlu0 %2390, %v1820_v31   ;;  %v3190_v28 = vpop.permute.xlu1 %732 }
 0x112   :  { %1919 = vperm.xlu1 %2391, %v1821_v32  }
 0x113   :  { %v648_v29 = vpop.permute.xlu0 %647 }
 0x114   :  { %996 = vmatmul.mubr.bf16.gmra.mrb[4].mxu0 %v2397_v33 }
 0x115   :  { %1924 = vperm.xlu0 %2390, %v1822_v35   ;;  %1003 = vmatprep.mubr.bf16.mxu0 %v2398_v34  ;;  %v653_v30 = vpop.permute.xlu1 %652 }
 0x116   :  { %1929 = vperm.xlu1 %2391, %v1823_v36  }
 0x117   :  { %v3192_v31 = vpop.permute.xlu0 %737 }
 0x119   :  { %1934 = vperm.xlu0 %2390, %v1824_v37   ;;  %v3194_v32 = vpop.permute.xlu1 %742 }
 0x11a   :  { %1377 = vperm.xlu1 %2391, %v1251_v38  }
 0x11b   :  { %v658_v33 = vpop.permute.xlu0 %657 }
 0x11c   :  { %1004 = vmatmul.mubr.bf16.gmra.mrb[8].mxu0 %v2400_v39 }
 0x11d   :  { %1939 = vperm.xlu0 %2390, %v1825_v41   ;;  %1011 = vmatprep.mubr.bf16.mxu0 %v2401_v40  ;;  %v663_v35 = vpop.permute.xlu1 %662 }
 0x11e   :  { %1382 = vperm.xlu1 %2391, %v1252_v42  }
 0x11f   :  { %v3196_v42 = vpop.permute.xlu0 %747 }
 0x121   :  { %1944 = vperm.xlu0 %2390, %v1826_v43  }
 0x122   :  { %1387 = vperm.xlu1 %2391, %v1253_v44  }
 0x124   :  { %1012 = vmatmul.mubr.bf16.gmra.mrb[12].mxu0 %v2403_v45  ;;  %v3198_v45 = vpop.permute.xlu1 %752 }
 0x125   :  { %1949 = vperm.xlu0 %2390, %v1827_v47   ;;  %1019 = vmatprep.mubr.bf16.mxu0 %v2404_v46  ;;  %v2442_v46 = vld [vmem:[%s3420_s5 + $0x4] ss:$8 sps:$4 sm:$0xff]  }
 0x126   :  { %1392 = vperm.xlu1 %2391, %v1254_v48   ;;  %1612 = vmatprep.mubr.bf16.mxu1 %v2442_v46 }
 0x129   :  { %1954 = vperm.xlu0 %2390, %v1828_v49  }
 0x12a   :  { %1397 = vperm.xlu1 %2391, %v1255_v50  }
 0x12c   :  { %1020 = vmatmul.mubr.bf16.gmra.mrb[16].mxu0 %v2406_v51 }
 0x12d   :  { %1959 = vperm.xlu0 %2390, %v1829_v53   ;;  %1027 = vmatprep.mubr.bf16.mxu0 %v2407_v52 }
 0x12e   :  { %1402 = vperm.xlu1 %2391, %v1256_v54   ;;  %v668_v54 = vpop.permute.xlu0 %667 }
 0x131   :  { %1964 = vperm.xlu0 %2390, %v1830_v55  }
 0x132   :  { %1407 = vperm.xlu1 %2391, %v1257_v56  }
 0x134   :  { %1028 = vmatmul.mubr.bf16.gmra.mrb[20].mxu0 %v2409_v57 }
 0x135   :  { %1969 = vperm.xlu0 %2390, %v1831_v59   ;;  %1035 = vmatprep.mubr.bf16.mxu0 %v2410_v58  ;;  %v673_v59 = vpop.permute.xlu1 %672 }
 0x136   :  { %1412 = vperm.xlu1 %2391, %v1258_v60  }
 0x139   :  { %1974 = vperm.xlu0 %2390, %v1832_v61  }
 0x13a   :  { %1417 = vperm.xlu1 %2391, %v1259_v62  }
 0x13c   :  { %1036 = vmatmul.mubr.bf16.gmra.mrb[24].mxu0 %v2412_v63 }
 0x13d   :  { %1979 = vperm.xlu0 %2390, %v1833_v1   ;;  %1043 = vmatprep.mubr.bf16.mxu0 %v2413_v0  ;;  %v3205_v0 = vpop.permute.xlu0 %757 }
 0x13e   :  { %1984 = vperm.xlu1 %2391, %v1834_v2  }
 0x141   :  { %1989 = vperm.xlu0 %2390, %v1835_v3  }
 0x142   :  { %1994 = vperm.xlu1 %2391, %v1836_v4  }
 0x144   :  { %1044 = vmatmul.mubr.bf16.gmra.mrb[28].mxu0 %v2415_v5 }
 0x145   :  { %2069 = vperm.xlu0 %2390, %v2066_v7   ;;  %1051 = vmatprep.mubr.bf16.mxu0 %v2416_v6  ;;  %v3207_v6 = vpop.permute.xlu1 %762 }
 0x14c   :  { %1052 = vmatmul.mubr.bf16.gmra.mrb[32].mxu0 %v2418_v9 }
 0x14d   :  { %1059 = vmatprep.mubr.bf16.mxu0 %v2419_v10 }
 0x154   :  { %1060 = vmatmul.mubr.bf16.gmra.mrb[36].mxu0 %v2421_v11 }
 0x155   :  { %1067 = vmatprep.mubr.bf16.mxu0 %v2422_v12 }
 0x15c   :  { %1068 = vmatmul.mubr.bf16.gmra.mrb[40].mxu0 %v2424_v13 }
 0x15d   :  { %1075 = vmatprep.mubr.bf16.mxu0 %v2425_v14  ;;  %v678_v14 = vpop.permute.xlu0 %677 }
 0x164   :  { %1076 = vmatmul.mubr.bf16.gmra.mrb[44].mxu0 %v2427_v15 }
 0x165   :  { %1083 = vmatprep.mubr.bf16.mxu0 %v2428_v16 }
 0x16c   :  { %1084 = vmatmul.mubr.bf16.gmra.mrb[48].mxu0 %v2430_v17  ;;  %v683_v17 = vpop.permute.xlu1 %682 }
 0x16d   :  { %1091 = vmatprep.mubr.bf16.mxu0 %v2431_v18 }
 0x174   :  { %1092 = vmatmul.mubr.bf16.gmra.mrb[52].mxu0 %v2433_v19 }
 0x175   :  { %1099 = vmatprep.mubr.bf16.mxu0 %v2434_v8 }
 0x17c   :  { %1100 = vmatmul.mubr.bf16.gmra.mrb[56].mxu0 %v2436_v20 }
 0x17d   :  { %1107 = vmatprep.mubr.bf16.mxu0 %v2437_v21 }
 0x184   :  { %1108 = vmatmul.mubr.bf16.gmra.mrb[60].mxu0 %v2439_v22 }
 0x1df   :  { %v2180_v34 = vpop.f32.mrb[0].mxu0 }
 0x1e0   :  { %v2181_v36 = vpop.f32.mrb[1].mxu0 }
 0x1e1   :  { %v2182_v37 = vadd.f32 %v2181_v36, %v2180_v34  ;;  %v2183_v38 = vpop.f32.mrb[2].mxu0  ;;  %v3215_v36 = vpop.permute.xlu1 %772 }
 0x1e2   :  { %v2184_v39 = vpop.f32.mrb[3].mxu0 }
 0x1e3   :  { %v990_v40 = vadd.f32 %v2182_v37, %v638_v25  ;;  %v2185_v41 = vadd.f32 %v2184_v39, %v2183_v38 }
 0x1e5   :  { %v1116_v43 = vmul.f32 0.01, %v990_v40  ;;  %v993_v44 = vadd.f32 %v2185_v41, %v643_v26 }
 0x1e7   :  { %v1117_v47 = vmul.f32 0.01, %v993_v44  ;;  %v2186_v48 = vpop.f32.mrb[4].mxu0  ;;  %v1148_v52 = vmax.f32 %v990_v40, %v1116_v43 }
 0x1e8   :  { %v2187_v49 = vpop.f32.mrb[5].mxu0 }
 0x1e9   :  { %v2188_v50 = vadd.f32 %v2187_v49, %v2186_v48  ;;  %v2189_v51 = vpop.f32.mrb[6].mxu0  ;;  %v1149_v53 = vmax.f32 %v993_v44, %v1117_v47 }
 0x1ea   :  { %v2190_v55 = vpop.f32.mrb[7].mxu0 }
 0x1eb   :  { %v998_v56 = vadd.f32 %v2188_v50, %v648_v29  ;;  %v2191_v57 = vadd.f32 %v2190_v55, %v2189_v51  ;;  %v3203_v58 = vpack.c.bf16 %v1149_v53, %v1148_v52  ;;  %v693_v50 = vpop.permute.xlu1 %692 }
 0x1ed   :  { %v1118_v60 = vmul.f32 0.01, %v998_v56  ;;  %v1001_v61 = vadd.f32 %v2191_v57, %v653_v30  ;;  %v3213_v30 = vpop.permute.xlu0 %767 }
 0x1ef   :  { %v1119_v62 = vmul.f32 0.01, %v1001_v61  ;;  %v2192_v63 = vpop.f32.mrb[8].mxu0  ;;  %v1150_v2 = vmax.f32 %v998_v56, %v1118_v60 }
 0x1f0   :  { %v2193_v1 = vpop.f32.mrb[9].mxu0 }
 0x1f1   :  { %v1151_v3 = vmax.f32 %v1001_v61, %v1119_v62  ;;  %v2194_v4 = vadd.f32 %v2193_v1, %v2192_v63  ;;  %v2195_v5 = vpop.f32.mrb[10].mxu0  ;;  %v688_v44 = vpop.permute.xlu0 %687 }
 0x1f2   :  { %v2196_v7 = vpop.f32.mrb[11].mxu0  ;;  %v3221_v62 = vpop.permute.xlu1 %782 }
 0x1f3   :  { %v1006_v9 = vadd.f32 %v2194_v4, %v658_v33  ;;  %v2197_v10 = vadd.f32 %v2196_v7, %v2195_v5  ;;  %v3209_v11 = vpack.c.bf16 %v1151_v3, %v1150_v2 }
 0x1f5   :  { %v1120_v12 = vmul.f32 0.01, %v1006_v9  ;;  %v1009_v13 = vadd.f32 %v2197_v10, %v663_v35  ;;  %v3219_v55 = vpop.permute.xlu0 %777 }
 0x1f7   :  { %v1121_v15 = vmul.f32 0.01, %v1009_v13  ;;  %v2198_v16 = vpop.f32.mrb[12].mxu0  ;;  %v1152_v19 = vmax.f32 %v1006_v9, %v1120_v12  ;;  %v703_v12 = vpop.permute.xlu1 %702 }
 0x1f8   :  { %v2199_v18 = vpop.f32.mrb[13].mxu0 }
 0x1f9   :  { %v1153_v8 = vmax.f32 %v1009_v13, %v1121_v15  ;;  %v2200_v20 = vadd.f32 %v2199_v18, %v2198_v16  ;;  %v2201_v21 = vpop.f32.mrb[14].mxu0  ;;  %v698_v7 = vpop.permute.xlu0 %697 }
 0x1fa   :  { %v2202_v22 = vpop.f32.mrb[15].mxu0 }
 0x1fb   :  { %v1014_v25 = vadd.f32 %v2200_v20, %v668_v54  ;;  %v2203_v26 = vadd.f32 %v2202_v22, %v2201_v21  ;;  %v3211_v29 = vpack.c.bf16 %v1153_v8, %v1152_v19 }
 0x1fd   :  { %v1122_v33 = vmul.f32 0.01, %v1014_v25  ;;  %v1017_v34 = vadd.f32 %v2203_v26, %v673_v59  ;;  %v3227_v21 = vpop.permute.xlu0 %787  ;;  %v3229_v26 = vpop.permute.xlu1 %792 }
 0x1ff   :  { %v1123_v35 = vmul.f32 0.01, %v1017_v34  ;;  %v2204_v37 = vpop.f32.mrb[16].mxu0  ;;  %v1154_v39 = vmax.f32 %v1014_v25, %v1122_v33 }
 0x200   :  { %v2205_v38 = vpop.f32.mrb[17].mxu0 }
 0x201   :  { %v1155_v40 = vmax.f32 %v1017_v34, %v1123_v35  ;;  %v2206_v41 = vadd.f32 %v2205_v38, %v2204_v37  ;;  %v2207_v43 = vpop.f32.mrb[18].mxu0 }
 0x202   :  { %v2208_v46 = vpop.f32.mrb[19].mxu0 }
 0x203   :  { %v1022_v47 = vadd.f32 %v2206_v41, %v678_v14  ;;  %v2209_v48 = vadd.f32 %v2208_v46, %v2207_v43  ;;  %v3217_v49 = vpack.c.bf16 %v1155_v40, %v1154_v39  ;;  %v708_v41 = vpop.permute.xlu0 %707 }
 0x205   :  { %v1124_v51 = vmul.f32 0.01, %v1022_v47  ;;  %v1025_v52 = vadd.f32 %v2209_v48, %v683_v17  ;;  %v713_v48 = vpop.permute.xlu1 %712 }
 0x207   :  { %v1125_v53 = vmul.f32 0.01, %v1025_v52  ;;  %v2210_v54 = vpop.f32.mrb[20].mxu0  ;;  %v1156_v57 = vmax.f32 %v1022_v47, %v1124_v51 }
 0x208   :  { %v2211_v56 = vpop.f32.mrb[21].mxu0 }
 0x209   :  { %v1157_v59 = vmax.f32 %v1025_v52, %v1125_v53  ;;  %v2212_v60 = vadd.f32 %v2211_v56, %v2210_v54  ;;  %v2213_v61 = vpop.f32.mrb[22].mxu0 }
 0x20a   :  { %v2214_v63 = vpop.f32.mrb[23].mxu0 }
 0x20b   :  { %v1030_v1 = vadd.f32 %v2212_v60, %v688_v44  ;;  %v2215_v2 = vadd.f32 %v2214_v63, %v2213_v61  ;;  %v3223_v3 = vpack.c.bf16 %v1157_v59, %v1156_v57 }
 0x20d   :  { %v1126_v4 = vmul.f32 0.01, %v1030_v1  ;;  %v1033_v5 = vadd.f32 %v2215_v2, %v693_v50 }
 0x20f   :  { %v1127_v9 = vmul.f32 0.01, %v1033_v5  ;;  %v2216_v10 = vpop.f32.mrb[24].mxu0  ;;  %v1158_v14 = vmax.f32 %v1030_v1, %v1126_v4 }
 0x210   :  { %v2217_v13 = vpop.f32.mrb[25].mxu0 }
 0x211   :  { %v1159_v15 = vmax.f32 %v1033_v5, %v1127_v9  ;;  %v2218_v16 = vadd.f32 %v2217_v13, %v2216_v10  ;;  %v2219_v17 = vpop.f32.mrb[26].mxu0 }
 0x212   :  { %v2220_v18 = vpop.f32.mrb[27].mxu0 }
 0x213   :  { %v1038_v19 = vadd.f32 %v2218_v16, %v698_v7  ;;  %v2221_v8 = vadd.f32 %v2220_v18, %v2219_v17  ;;  %v3225_v20 = vpack.c.bf16 %v1159_v15, %v1158_v14 }
 0x215   :  { %v1128_v22 = vmul.f32 0.01, %v1038_v19  ;;  %v1041_v25 = vadd.f32 %v2221_v8, %v703_v12 }
 0x217   :  { %v1129_v33 = vmul.f32 0.01, %v1041_v25  ;;  %v2222_v34 = vpop.f32.mrb[28].mxu0  ;;  %v1160_v37 = vmax.f32 %v1038_v19, %v1128_v22 }
 0x218   :  { %v2223_v35 = vpop.f32.mrb[29].mxu0 }
 0x219   :  { %v1161_v38 = vmax.f32 %v1041_v25, %v1129_v33  ;;  %v2224_v39 = vadd.f32 %v2223_v35, %v2222_v34  ;;  %v2225_v40 = vpop.f32.mrb[30].mxu0 }
 0x21a   :  { %v2226_v43 = vpop.f32.mrb[31].mxu0 }
 0x21b   :  { %v1046_v44 = vadd.f32 %v2224_v39, %v708_v41  ;;  %v2227_v46 = vadd.f32 %v2226_v43, %v2225_v40  ;;  %v3231_v47 = vpack.c.bf16 %v1161_v38, %v1160_v37 }
 0x21d   :  { %v1130_v50 = vmul.f32 0.01, %v1046_v44  ;;  %v1049_v51 = vadd.f32 %v2227_v46, %v713_v48 }
 0x21f   :  { %v1131_v52 = vmul.f32 0.01, %v1049_v51  ;;  %v2228_v53 = vpop.f32.mrb[32].mxu0  ;;  %v1162_v56 = vmax.f32 %v1046_v44, %v1130_v50 }
 0x220   :  { %v2229_v54 = vpop.f32.mrb[33].mxu0 }
 0x221   :  { %v1163_v57 = vmax.f32 %v1049_v51, %v1131_v52  ;;  %v2230_v59 = vadd.f32 %v2229_v54, %v2228_v53  ;;  %v2231_v60 = vpop.f32.mrb[34].mxu0 }
 0x222   :  { %v2232_v61 = vpop.f32.mrb[35].mxu0 }
 0x223   :  { %v1054_v63 = vadd.f32 %v2230_v59, %v3184_v23  ;;  %v2233_v1 = vadd.f32 %v2232_v61, %v2231_v60  ;;  %v3234_v2 = vpack.c.bf16 %v1163_v57, %v1162_v56 }
 0x225   :  { %v1057_v4 = vadd.f32 %v2233_v1, %v3186_v24  ;;  %v1132_v5 = vmul.f32 0.01, %v1054_v63 }
 0x227   :  { %v2234_v7 = vpop.f32.mrb[36].mxu0  ;;  %v1133_v9 = vmul.f32 0.01, %v1057_v4  ;;  %v1164_v14 = vmax.f32 %v1054_v63, %v1132_v5 }
 0x228   :  { %v2235_v10 = vpop.f32.mrb[37].mxu0 }
 0x229   :  { %v2236_v12 = vadd.f32 %v2235_v10, %v2234_v7  ;;  %v2237_v13 = vpop.f32.mrb[38].mxu0  ;;  %v1165_v15 = vmax.f32 %v1057_v4, %v1133_v9 }
 0x22a   :  { %v2238_v16 = vpop.f32.mrb[39].mxu0 }
 0x22b   :  { %v1062_v17 = vadd.f32 %v2236_v12, %v3188_v27  ;;  %v2239_v18 = vadd.f32 %v2238_v16, %v2237_v13  ;;  %v1220_v19 = vpack.c.bf16 %v1165_v15, %v1164_v14 }
 0x22d   :  { %v1134_v8 = vmul.f32 0.01, %v1062_v17  ;;  %v1065_v23 = vadd.f32 %v2239_v18, %v3190_v28  ;;  %2276 = vmatprep.subr.bf16.mxu1 %v1220_v19 }
 0x22e   :  { %2277 = vmatpush3.bf16.msra.mxu1 %v3203_v58 }
 0x22f   :  { %v1135_v24 = vmul.f32 0.01, %v1065_v23  ;;  %v2240_v22 = vpop.f32.mrb[40].mxu0  ;;  %v1166_v33 = vmax.f32 %v1062_v17, %v1134_v8 }
 0x230   :  { %v2241_v25 = vpop.f32.mrb[41].mxu0 }
 0x231   :  { %v1167_v34 = vmax.f32 %v1065_v23, %v1135_v24  ;;  %v2242_v35 = vadd.f32 %v2241_v25, %v2240_v22  ;;  %v2243_v37 = vpop.f32.mrb[42].mxu0 }
 0x232   :  { %v2244_v38 = vpop.f32.mrb[43].mxu0 }
 0x233   :  { %v1070_v39 = vadd.f32 %v2242_v35, %v3192_v31  ;;  %v2245_v40 = vadd.f32 %v2244_v38, %v2243_v37  ;;  %v1221_v27 = vpack.c.bf16 %v1167_v34, %v1166_v33 }
 0x235   :  { %v1136_v41 = vmul.f32 0.01, %v1070_v39  ;;  %v1073_v43 = vadd.f32 %v2245_v40, %v3194_v32  ;;  %2278 = vmatprep.subr.bf16.mxu1 %v1221_v27 }
 0x236   :  { %2279 = vmatpush3.bf16.msra.mxu1 %v3209_v11 }
 0x237   :  { %v1137_v28 = vmul.f32 0.01, %v1073_v43  ;;  %v2246_v58 = vpop.f32.mrb[44].mxu0  ;;  %v1168_v46 = vmax.f32 %v1070_v39, %v1136_v41 }
 0x238   :  { %v2247_v44 = vpop.f32.mrb[45].mxu0 }
 0x239   :  { %v1169_v48 = vmax.f32 %v1073_v43, %v1137_v28  ;;  %v2248_v50 = vadd.f32 %v2247_v44, %v2246_v58  ;;  %v2249_v51 = vpop.f32.mrb[46].mxu0 }
 0x23a   :  { %v2250_v52 = vpop.f32.mrb[47].mxu0 }
 0x23b   :  { %v1078_v53 = vadd.f32 %v2248_v50, %v3196_v42  ;;  %v2251_v54 = vadd.f32 %v2250_v52, %v2249_v51  ;;  %v1222_v31 = vpack.c.bf16 %v1169_v48, %v1168_v46 }
 0x23d   :  { %v1138_v56 = vmul.f32 0.01, %v1078_v53  ;;  %v1081_v57 = vadd.f32 %v2251_v54, %v3198_v45  ;;  %2280 = vmatprep.subr.bf16.mxu1 %v1222_v31  ;;  %v2440_v54 = vld [vmem:[%s3420_s5] ss:$8 sps:$4 sm:$0xff]   ;;  %v2449_v31 = vld [vmem:[%s3420_s5 + $0x34] ss:$8 sps:$4 sm:$0xff]  }
 0x23e   :  { %2281 = vmatpush3.bf16.msra.mxu1 %v3211_v29 }
 0x23f   :  { %v1139_v32 = vmul.f32 0.01, %v1081_v57  ;;  %v2252_v11 = vpop.f32.mrb[48].mxu0  ;;  %v1170_v60 = vmax.f32 %v1078_v53, %v1138_v56  ;;  %v2451_v56 = vld [vmem:[%s3420_s5 + $0x30] ss:$8 sps:$4 sm:$0xff]  }
 0x240   :  { %v2253_v59 = vpop.f32.mrb[49].mxu0 }
 0x241   :  { %v1171_v61 = vmax.f32 %v1081_v57, %v1139_v32  ;;  %v2254_v63 = vadd.f32 %v2253_v59, %v2252_v11  ;;  %v2255_v1 = vpop.f32.mrb[50].mxu0  ;;  %v2452_v57 = vld [vmem:[%s3420_s5 + $0x44] ss:$8 sps:$4 sm:$0xff]   ;;  %v2454_v32 = vld [vmem:[%s3420_s5 + $0x40] ss:$8 sps:$4 sm:$0xff]  }
 0x242   :  { %v2256_v4 = vpop.f32.mrb[51].mxu0  ;;  %v2455_v11 = vld [vmem:[%s3420_s5 + $0x54] ss:$8 sps:$4 sm:$0xff]   ;;  %v2457_v59 = vld [vmem:[%s3420_s5 + $0x50] ss:$8 sps:$4 sm:$0xff]  }
 0x243   :  { %v1086_v5 = vadd.f32 %v2254_v63, %v3205_v0  ;;  %v2257_v7 = vadd.f32 %v2256_v4, %v2255_v1  ;;  %v1223_v42 = vpack.c.bf16 %v1171_v61, %v1170_v60  ;;  %v2458_v60 = vld [vmem:[%s3420_s5 + $0x64] ss:$8 sps:$4 sm:$0xff]   ;;  %v2460_v61 = vld [vmem:[%s3420_s5 + $0x60] ss:$8 sps:$4 sm:$0xff]   ;;  %v2461_v63 = vld [vmem:[%s3420_s5 + $0x74] ss:$8 sps:$4 sm:$0xff]  }
 0x244   :  { %v2463_v1 = vld [vmem:[%s3420_s5 + $0x70] ss:$8 sps:$4 sm:$0xff]   ;;  %v2464_v4 = vld [vmem:[%s3420_s5 + $0x84] ss:$8 sps:$4 sm:$0xff]  }
 0x245   :  { %v1140_v9 = vmul.f32 0.01, %v1086_v5  ;;  %v1089_v10 = vadd.f32 %v2257_v7, %v3207_v6  ;;  %2282 = vmatprep.subr.bf16.mxu1 %v1223_v42  ;;  %v2467_v7 = vld [vmem:[%s3420_s5 + $0x94] ss:$8 sps:$4 sm:$0xff]   ;;  %v2469_v42 = vld [vmem:[%s3420_s5 + $0x90] ss:$8 sps:$4 sm:$0xff]  }
 0x246   :  { %2283 = vmatpush3.bf16.msra.mxu1 %v3217_v49 }
 0x247   :  { %v1141_v45 = vmul.f32 0.01, %v1089_v10  ;;  %v2258_v29 = vpop.f32.mrb[52].mxu0  ;;  %v1172_v13 = vmax.f32 %v1086_v5, %v1140_v9  ;;  %v2466_v5 = vld [vmem:[%s3420_s5 + $0x80] ss:$8 sps:$4 sm:$0xff]  }
 0x248   :  { %v2259_v12 = vpop.f32.mrb[53].mxu0  ;;  %v2470_v9 = vld [vmem:[%s3420_s5 + $0xa4] ss:$8 sps:$4 sm:$0xff]  }
 0x249   :  { %v1173_v14 = vmax.f32 %v1089_v10, %v1141_v45  ;;  %v2260_v15 = vadd.f32 %v2259_v12, %v2258_v29  ;;  %v2261_v16 = vpop.f32.mrb[54].mxu0  ;;  %v2472_v10 = vld [vmem:[%s3420_s5 + $0xa0] ss:$8 sps:$4 sm:$0xff]   ;;  %v2473_v45 = vld [vmem:[%s3420_s5 + $0xb4] ss:$8 sps:$4 sm:$0xff]  }
 0x24a   :  { %v2262_v17 = vpop.f32.mrb[55].mxu0  ;;  %v2475_v29 = vld [vmem:[%s3420_s5 + $0xb0] ss:$8 sps:$4 sm:$0xff]   ;;  %v2476_v12 = vld [vmem:[%s3420_s5 + $0xc4] ss:$8 sps:$4 sm:$0xff]  }
 0x24b   :  { %v1094_v18 = vadd.f32 %v2260_v15, %v3213_v30  ;;  %v2263_v19 = vadd.f32 %v2262_v17, %v2261_v16  ;;  %v1224_v0 = vpack.c.bf16 %v1173_v14, %v1172_v13  ;;  %v2478_v13 = vld [vmem:[%s3420_s5 + $0xc0] ss:$8 sps:$4 sm:$0xff]   ;;  %v2479_v14 = vld [vmem:[%s3420_s5 + $0xd4] ss:$8 sps:$4 sm:$0xff]   ;;  %v2481_v15 = vld [vmem:[%s3420_s5 + $0xd0] ss:$8 sps:$4 sm:$0xff]  }
 0x24c   :  { %v2482_v16 = vld [vmem:[%s3420_s5 + $0xe4] ss:$8 sps:$4 sm:$0xff]   ;;  %v2484_v17 = vld [vmem:[%s3420_s5 + $0xe0] ss:$8 sps:$4 sm:$0xff]  }
 0x24d   :  { %v1142_v8 = vmul.f32 0.01, %v1094_v18  ;;  %v1097_v23 = vadd.f32 %v2263_v19, %v3215_v36  ;;  %2284 = vmatprep.subr.bf16.mxu1 %v1224_v0  ;;  %v2487_v19 = vld [vmem:[%s3420_s5 + $0xf0] ss:$8 sps:$4 sm:$0xff]   ;;  %v1263_v0 = vpop.permute.xlu0 %1262 }
 0x24e   :  { %2285 = vmatpush3.bf16.msra.mxu1 %v3223_v3 }
 0x24f   :  { %v1143_v6 = vmul.f32 0.01, %v1097_v23  ;;  %v2264_v49 = vpop.f32.mrb[56].mxu0  ;;  %v1174_v22 = vmax.f32 %v1094_v18, %v1142_v8  ;;  %v2485_v18 = vld [vmem:[%s3420_s5 + $0xf4] ss:$8 sps:$4 sm:$0xff]   ;;  %v1268_v8 = vpop.permute.xlu1 %1267 }
 0x250   :  { %v2265_v24 = vpop.f32.mrb[57].mxu0 }
 0x251   :  { %v1175_v25 = vmax.f32 %v1097_v23, %v1143_v6  ;;  %v2266_v33 = vadd.f32 %v2265_v24, %v2264_v49  ;;  %v2267_v34 = vpop.f32.mrb[58].mxu0  ;;  %v1273_v23 = vpop.permute.xlu0 %1272 }
 0x252   :  { %v2268_v35 = vpop.f32.mrb[59].mxu0 }
 0x253   :  { %v1102_v37 = vadd.f32 %v2266_v33, %v3219_v55  ;;  %v2269_v38 = vadd.f32 %v2268_v35, %v2267_v34  ;;  %v1225_v30 = vpack.c.bf16 %v1175_v25, %v1174_v22  ;;  %v1278_v6 = vpop.permute.xlu1 %1277 }
 0x255   :  { %v1144_v39 = vmul.f32 0.01, %v1102_v37  ;;  %v1105_v40 = vadd.f32 %v2269_v38, %v3221_v62  ;;  %2286 = vmatprep.subr.bf16.mxu1 %v1225_v30  ;;  %v1283_v49 = vpop.permute.xlu0 %1282 }
 0x256   :  { %2287 = vmatpush3.bf16.msra.mxu1 %v3225_v20 }
 0x257   :  { %v1145_v36 = vmul.f32 0.01, %v1105_v40  ;;  %v2270_v3 = vpop.f32.mrb[60].mxu0  ;;  %v1176_v41 = vmax.f32 %v1102_v37, %v1144_v39  ;;  %v1288_v24 = vpop.permute.xlu1 %1287 }
 0x258   :  { %v2271_v27 = vpop.f32.mrb[61].mxu0 }
 0x259   :  { %v1177_v43 = vmax.f32 %v1105_v40, %v1145_v36  ;;  %v2272_v28 = vadd.f32 %v2271_v27, %v2270_v3  ;;  %v2273_v58 = vpop.f32.mrb[62].mxu0  ;;  %v3352_v22 = vpop.permute.xlu0 %1292 }
 0x25a   :  { %v2274_v44 = vpop.f32.mrb[63].mxu0 }
 0x25b   :  { %v1110_v46 = vadd.f32 %v2272_v28, %v3227_v21  ;;  %v2275_v48 = vadd.f32 %v2274_v44, %v2273_v58  ;;  %v1226_v55 = vpack.c.bf16 %v1177_v43, %v1176_v41  ;;  %v2443_v21 = vld [vmem:[%s3420_s5 + $0x14] ss:$8 sps:$4 sm:$0xff]   ;;  %v3354_v25 = vpop.permute.xlu1 %1297 }
 0x25d   :  { %v1146_v50 = vmul.f32 0.01, %v1110_v46  ;;  %v1113_v51 = vadd.f32 %v2275_v48, %v3229_v26  ;;  %2288 = vmatprep.subr.bf16.mxu1 %v1226_v55  ;;  %v2445_v26 = vld [vmem:[%s3420_s5 + $0x10] ss:$8 sps:$4 sm:$0xff]   ;;  %v3356_v33 = vpop.permute.xlu0 %1302 }
 0x25e   :  { %2289 = vmatpush3.bf16.msra.mxu1 %v3231_v47  ;;  %v2446_v47 = vld [vmem:[%s3420_s5 + $0x24] ss:$8 sps:$4 sm:$0xff]  }
 0x25f   :  { %v1147_v62 = vmul.f32 0.01, %v1113_v51  ;;  %v1178_v20 = vmax.f32 %v1110_v46, %v1146_v50  ;;  %v3358_v34 = vpop.permute.xlu1 %1307 }
 0x261   :  { %v1179_v52 = vmax.f32 %v1113_v51, %v1147_v62  ;;  %v3360_v35 = vpop.permute.xlu0 %1312 }
 0x263   :  { %v1227_v53 = vpack.c.bf16 %v1179_v52, %v1178_v20  ;;  %v3362_v37 = vpop.permute.xlu1 %1317 }
 0x265   :  { %2290 = vmatprep.subr.bf16.mxu1 %v1227_v53  ;;  %v3364_v38 = vpop.permute.xlu0 %1322 }
 0x266   :  { %2291 = vmatpush3.bf16.msra.mxu1 %v3234_v2  ;;  %v2448_v2 = vld [vmem:[%s3420_s5 + $0x20] ss:$8 sps:$4 sm:$0xff]   ;;  %s2517_s5 = smov [#allocation3]  }
 0x267   :  { %v3366_v30 = vpop.permute.xlu1 %1327  ;;  %s2090_s28 = sshll.u32 %s2517_s5, 4  ;;  %s2091_s28 = int_to_ptr.vmem [resolvable:$true] %s2090_s28 }
 0x268   :  { %s2492_s29 = scalar_lea.vmem %s2091_s28, 16  ;;  %s2496_s30 = scalar_lea.vmem %s2091_s28, 32 }
 0x269   :  { %1613 = vmatmul.mubr.bf16.vlgmr.msra.gmra.mrb[0].mxu1 %v2440_v54  ;;  %v3368_v39 = vpop.permute.xlu0 %1332  ;;  %p2493_p0 = scmp.ne.s32.totalorder %s2091_s28, %s2492_s29  ;;  %p2497_p1 = scmp.lt.s32.totalorder %s2091_s28, %s2091_s28 }
 0x26a   :  { %1620 = vmatprep.mubr.bf16.mxu1 %v2443_v21  ;;  %p2498_p2 = scmp.lt.s32.totalorder %s2496_s30, %s2492_s29 }
 0x26b   :  { %v3370_v40 = vpop.permute.xlu1 %1337 }
 0x26c   :  { %p2499_p3 = por %p2498_p2, %p2497_p1 }
 0x26d   :  { %v3372_v36 = vpop.permute.xlu0 %1342 }
 0x26e   :  { %p2500_p4 = pnand %p2499_p3, %p2493_p0 }
 0x26f   :  { %v3374_v3 = vpop.permute.xlu1 %1347 }
 0x271   :  { %1621 = vmatmul.mubr.bf16.gmra.mrb[4].mxu1 %v2445_v26  ;;  %v3376_v27 = vpop.permute.xlu0 %1352 }
 0x272   :  { %1628 = vmatprep.mubr.bf16.mxu1 %v2446_v47 }
 0x273   :  { %v3378_v41 = vpop.permute.xlu1 %1357 }
 0x275   :  { %v3380_v43 = vpop.permute.xlu0 %1362 }
 0x277   :  { %v3382_v48 = vpop.permute.xlu1 %1367 }
 0x279   :  { %1629 = vmatmul.mubr.bf16.gmra.mrb[8].mxu1 %v2448_v2  ;;  %v3384_v62 = vpop.permute.xlu0 %1372 }
 0x27a   :  { %1636 = vmatprep.mubr.bf16.mxu1 %v2449_v31 }
 0x27b   :  { %v1840_v26 = vpop.permute.xlu1 %1839 }
 0x281   :  { %1637 = vmatmul.mubr.bf16.gmra.mrb[12].mxu1 %v2451_v56 }
 0x282   :  { %1644 = vmatprep.mubr.bf16.mxu1 %v2452_v57  ;;  %v1845_v57 = vpop.permute.xlu0 %1844 }
 0x289   :  { %1645 = vmatmul.mubr.bf16.gmra.mrb[16].mxu1 %v2454_v32 }
 0x28a   :  { %1652 = vmatprep.mubr.bf16.mxu1 %v2455_v11 }
 0x291   :  { %1653 = vmatmul.mubr.bf16.gmra.mrb[20].mxu1 %v2457_v59 }
 0x292   :  { %1660 = vmatprep.mubr.bf16.mxu1 %v2458_v60 }
 0x299   :  { %1661 = vmatmul.mubr.bf16.gmra.mrb[24].mxu1 %v2460_v61 }
 0x29a   :  { %1668 = vmatprep.mubr.bf16.mxu1 %v2461_v63 }
 0x2a1   :  { %1669 = vmatmul.mubr.bf16.gmra.mrb[28].mxu1 %v2463_v1 }
 0x2a2   :  { %1676 = vmatprep.mubr.bf16.mxu1 %v2464_v4 }
 0x2a9   :  { %1677 = vmatmul.mubr.bf16.gmra.mrb[32].mxu1 %v2466_v5  ;;  %v1850_v5 = vpop.permute.xlu1 %1849 }
 0x2aa   :  { %1684 = vmatprep.mubr.bf16.mxu1 %v2467_v7 }
 0x2b1   :  { %1685 = vmatmul.mubr.bf16.gmra.mrb[36].mxu1 %v2469_v42 }
 0x2b2   :  { %1692 = vmatprep.mubr.bf16.mxu1 %v2470_v9 }
 0x2b9   :  { %1693 = vmatmul.mubr.bf16.gmra.mrb[40].mxu1 %v2472_v10 }
 0x2ba   :  { %1700 = vmatprep.mubr.bf16.mxu1 %v2473_v45 }
 0x2c1   :  { %1701 = vmatmul.mubr.bf16.gmra.mrb[44].mxu1 %v2475_v29 }
 0x2c2   :  { %1708 = vmatprep.mubr.bf16.mxu1 %v2476_v12 }
 0x2c9   :  { %1709 = vmatmul.mubr.bf16.gmra.mrb[48].mxu1 %v2478_v13 }
 0x2ca   :  { %1716 = vmatprep.mubr.bf16.mxu1 %v2479_v14  ;;  %v1855_v14 = vpop.permute.xlu0 %1854 }
 0x2d1   :  { %1717 = vmatmul.mubr.bf16.gmra.mrb[52].mxu1 %v2481_v15 }
 0x2d2   :  { %1724 = vmatprep.mubr.bf16.mxu1 %v2482_v16 }
 0x2d9   :  { %1725 = vmatmul.mubr.bf16.gmra.mrb[56].mxu1 %v2484_v17 }
 0x2da   :  { %1732 = vmatprep.mubr.bf16.mxu1 %v2485_v18 }
 0x2e1   :  { %1733 = vmatmul.mubr.bf16.gmra.mrb[60].mxu1 %v2487_v19 }
 0x33c   :  { %v2292_v28 = vpop.f32.mrb[0].mxu1 }
 0x33d   :  { %v2293_v58 = vpop.f32.mrb[1].mxu1 }
 0x33e   :  { %v2294_v44 = vadd.f32 %v2293_v58, %v2292_v28  ;;  %v2295_v46 = vpop.f32.mrb[2].mxu1 }
 0x33f   :  { %v2296_v55 = vpop.f32.mrb[3].mxu1 }
 0x340   :  { %v1615_v50 = vadd.f32 %v2294_v44, %v1263_v0  ;;  %v2297_v51 = vadd.f32 %v2296_v55, %v2295_v46  ;;  %v1860_v0 = vpop.permute.xlu1 %1859  ;;  %v1865_v46 = vpop.permute.xlu0 %1864 }
 0x342   :  { %v1741_v20 = vmul.f32 0.01, %v1615_v50  ;;  %v1618_v52 = vadd.f32 %v2297_v51, %v1268_v8 }
 0x344   :  { %v1773_v53 = vmax.f32 %v1615_v50, %v1741_v20  ;;  %v1742_v54 = vmul.f32 0.01, %v1618_v52  ;;  %v2298_v21 = vpop.f32.mrb[4].mxu1 }
 0x345   :  { %v2299_v47 = vpop.f32.mrb[5].mxu1 }
 0x346   :  { %v1774_v2 = vmax.f32 %v1618_v52, %v1742_v54  ;;  %v2300_v31 = vadd.f32 %v2299_v47, %v2298_v21  ;;  %v2301_v56 = vpop.f32.mrb[6].mxu1  ;;  %v1997_v11 = vmul.f32 %v1840_v26, %v1773_v53  ;;  %v1870_v53 = vpop.permute.xlu1 %1869 }
 0x347   :  { %v2302_v32 = vpop.f32.mrb[7].mxu1 }
 0x348   :  { %v1998_v59 = vmul.f32 %v1845_v57, %v1774_v2  ;;  %v1623_v60 = vadd.f32 %v2300_v31, %v1273_v23  ;;  %v2303_v61 = vadd.f32 %v2302_v32, %v2301_v56  ;;  %v1875_v56 = vpop.permute.xlu0 %1874 }
 0x34a   :  { %v2029_v63 = vadd.f32 %v1998_v59, %v1997_v11  ;;  %v1743_v1 = vmul.f32 0.01, %v1623_v60  ;;  %v1626_v4 = vadd.f32 %v2303_v61, %v1278_v6  ;;  %v1880_v59 = vpop.permute.xlu1 %1879 }
 0x34c   :  { %v1775_v7 = vmax.f32 %v1623_v60, %v1743_v1  ;;  %v1744_v42 = vmul.f32 0.01, %v1626_v4  ;;  %v2304_v9 = vpop.f32.mrb[8].mxu1 }
 0x34d   :  { %v2305_v10 = vpop.f32.mrb[9].mxu1 }
 0x34e   :  { %v1999_v45 = vmul.f32 %v1850_v5, %v1775_v7  ;;  %v1776_v29 = vmax.f32 %v1626_v4, %v1744_v42  ;;  %v2306_v12 = vadd.f32 %v2305_v10, %v2304_v9  ;;  %v2307_v13 = vpop.f32.mrb[10].mxu1  ;;  %v1885_v10 = vpop.permute.xlu0 %1884 }
 0x34f   :  { %v2308_v15 = vpop.f32.mrb[11].mxu1 }
 0x350   :  { %v2030_v16 = vadd.f32 %v2029_v63, %v1999_v45  ;;  %v2000_v17 = vmul.f32 %v1855_v14, %v1776_v29  ;;  %v1631_v18 = vadd.f32 %v2306_v12, %v1283_v49  ;;  %v2309_v19 = vadd.f32 %v2308_v15, %v2307_v13  ;;  %v1890_v12 = vpop.permute.xlu1 %1889 }
 0x352   :  { %v2031_v8 = vadd.f32 %v2030_v16, %v2000_v17  ;;  %v1745_v23 = vmul.f32 0.01, %v1631_v18  ;;  %v1634_v28 = vadd.f32 %v2309_v19, %v1288_v24 }
 0x354   :  { %v1777_v6 = vmax.f32 %v1631_v18, %v1745_v23  ;;  %v1746_v58 = vmul.f32 0.01, %v1634_v28  ;;  %v2310_v44 = vpop.f32.mrb[12].mxu1 }
 0x355   :  { %v2311_v55 = vpop.f32.mrb[13].mxu1 }
 0x356   :  { %v2001_v50 = vmul.f32 %v1860_v0, %v1777_v6  ;;  %v1778_v51 = vmax.f32 %v1634_v28, %v1746_v58  ;;  %v2312_v20 = vadd.f32 %v2311_v55, %v2310_v44  ;;  %v2313_v52 = vpop.f32.mrb[14].mxu1  ;;  %v1900_v44 = vpop.permute.xlu1 %1899 }
 0x357   :  { %v2314_v54 = vpop.f32.mrb[15].mxu1 }
 0x358   :  { %v2032_v21 = vadd.f32 %v2031_v8, %v2001_v50  ;;  %v2002_v26 = vmul.f32 %v1865_v46, %v1778_v51  ;;  %v1639_v49 = vadd.f32 %v2312_v20, %v3352_v22  ;;  %v2315_v47 = vadd.f32 %v2314_v54, %v2313_v52  ;;  %v1895_v8 = vpop.permute.xlu0 %1894 }
 0x35a   :  { %v2033_v2 = vadd.f32 %v2032_v21, %v2002_v26  ;;  %v1747_v31 = vmul.f32 0.01, %v1639_v49  ;;  %v1642_v24 = vadd.f32 %v2315_v47, %v3354_v25  ;;  %v1910_v47 = vpop.permute.xlu1 %1909 }
 0x35c   :  { %v1779_v57 = vmax.f32 %v1639_v49, %v1747_v31  ;;  %v1748_v32 = vmul.f32 0.01, %v1642_v24  ;;  %v2316_v11 = vpop.f32.mrb[16].mxu1  ;;  %v1905_v52 = vpop.permute.xlu0 %1904 }
 0x35d   :  { %v2317_v60 = vpop.f32.mrb[17].mxu1 }
 0x35e   :  { %v2003_v61 = vmul.f32 %v1870_v53, %v1779_v57  ;;  %v1780_v63 = vmax.f32 %v1642_v24, %v1748_v32  ;;  %v2318_v1 = vadd.f32 %v2317_v60, %v2316_v11  ;;  %v2319_v4 = vpop.f32.mrb[18].mxu1 }
 0x35f   :  { %v2320_v5 = vpop.f32.mrb[19].mxu1 }
 0x360   :  { %v2034_v7 = vadd.f32 %v2033_v2, %v2003_v61  ;;  %v2004_v42 = vmul.f32 %v1875_v56, %v1780_v63  ;;  %v1647_v22 = vadd.f32 %v2318_v1, %v3356_v33  ;;  %v2321_v9 = vadd.f32 %v2320_v5, %v2319_v4  ;;  %v1915_v11 = vpop.permute.xlu0 %1914  ;;  %v1920_v63 = vpop.permute.xlu1 %1919 }
 0x362   :  { %v2035_v45 = vadd.f32 %v2034_v7, %v2004_v42  ;;  %v1749_v29 = vmul.f32 0.01, %v1647_v22  ;;  %v1650_v25 = vadd.f32 %v2321_v9, %v3358_v34 }
 0x364   :  { %v1781_v13 = vmax.f32 %v1647_v22, %v1749_v29  ;;  %v1750_v14 = vmul.f32 0.01, %v1650_v25  ;;  %v2322_v15 = vpop.f32.mrb[20].mxu1  ;;  %v1925_v29 = vpop.permute.xlu0 %1924 }
 0x365   :  { %v2323_v16 = vpop.f32.mrb[21].mxu1 }
 0x366   :  { %v2005_v17 = vmul.f32 %v1880_v59, %v1781_v13  ;;  %v1782_v18 = vmax.f32 %v1650_v25, %v1750_v14  ;;  %v2324_v19 = vadd.f32 %v2323_v16, %v2322_v15  ;;  %v2325_v0 = vpop.f32.mrb[22].mxu1  ;;  %v1930_v13 = vpop.permute.xlu1 %1929 }
 0x367   :  { %v2326_v23 = vpop.f32.mrb[23].mxu1 }
 0x368   :  { %v2036_v28 = vadd.f32 %v2035_v45, %v2005_v17  ;;  %v2006_v6 = vmul.f32 %v1885_v10, %v1782_v18  ;;  %v1655_v33 = vadd.f32 %v2324_v19, %v3360_v35  ;;  %v2327_v58 = vadd.f32 %v2326_v23, %v2325_v0  ;;  %v1935_v23 = vpop.permute.xlu0 %1934 }
 0x36a   :  { %v2037_v46 = vadd.f32 %v2036_v28, %v2006_v6  ;;  %v1751_v55 = vmul.f32 0.01, %v1655_v33  ;;  %v1658_v34 = vadd.f32 %v2327_v58, %v3362_v37 }
 0x36c   :  { %v1783_v50 = vmax.f32 %v1655_v33, %v1751_v55  ;;  %v1752_v51 = vmul.f32 0.01, %v1658_v34  ;;  %v2328_v20 = vpop.f32.mrb[24].mxu1 }
 0x36d   :  { %v2329_v53 = vpop.f32.mrb[25].mxu1 }
 0x36e   :  { %v2007_v54 = vmul.f32 %v1890_v12, %v1783_v50  ;;  %v1784_v21 = vmax.f32 %v1658_v34, %v1752_v51  ;;  %v2330_v26 = vadd.f32 %v2329_v53, %v2328_v20  ;;  %v2331_v49 = vpop.f32.mrb[26].mxu1  ;;  %v1940_v20 = vpop.permute.xlu0 %1939 }
 0x36f   :  { %v2332_v2 = vpop.f32.mrb[27].mxu1 }
 0x370   :  { %v2038_v31 = vadd.f32 %v2037_v46, %v2007_v54  ;;  %v2008_v24 = vmul.f32 %v1895_v8, %v1784_v21  ;;  %v1663_v35 = vadd.f32 %v2330_v26, %v3364_v38  ;;  %v2333_v56 = vadd.f32 %v2332_v2, %v2331_v49 }
 0x372   :  { %v2039_v57 = vadd.f32 %v2038_v31, %v2008_v24  ;;  %v1753_v32 = vmul.f32 0.01, %v1663_v35  ;;  %v1666_v37 = vadd.f32 %v2333_v56, %v3366_v30 }
 0x374   :  { %v1785_v59 = vmax.f32 %v1663_v35, %v1753_v32  ;;  %v1754_v60 = vmul.f32 0.01, %v1666_v37  ;;  %v2334_v61 = vpop.f32.mrb[28].mxu1 }
 0x375   :  { %v2335_v1 = vpop.f32.mrb[29].mxu1 }
 0x376   :  { %v2009_v4 = vmul.f32 %v1900_v44, %v1785_v59  ;;  %v1786_v5 = vmax.f32 %v1666_v37, %v1754_v60  ;;  %v2336_v7 = vadd.f32 %v2335_v1, %v2334_v61  ;;  %v2337_v42 = vpop.f32.mrb[30].mxu1  ;;  %v1378_v44 = vpop.permute.xlu1 %1377 }
 0x377   :  { %v2338_v22 = vpop.f32.mrb[31].mxu1 }
 0x378   :  { %v2040_v9 = vadd.f32 %v2039_v57, %v2009_v4  ;;  %v2010_v10 = vmul.f32 %v1905_v52, %v1786_v5  ;;  %v1671_v38 = vadd.f32 %v2336_v7, %v3368_v39  ;;  %v2339_v45 = vadd.f32 %v2338_v22, %v2337_v42  ;;  %v1945_v57 = vpop.permute.xlu0 %1944 }
 0x37a   :  { %v2041_v25 = vadd.f32 %v2040_v9, %v2010_v10  ;;  %v1755_v12 = vmul.f32 0.01, %v1671_v38  ;;  %v1674_v30 = vadd.f32 %v2339_v45, %v3370_v40  ;;  %v1383_v49 = vpop.permute.xlu1 %1382 }
 0x37c   :  { %v1787_v14 = vmax.f32 %v1671_v38, %v1755_v12  ;;  %v1756_v15 = vmul.f32 0.01, %v1674_v30  ;;  %v2340_v16 = vpop.f32.mrb[32].mxu1  ;;  %v1950_v9 = vpop.permute.xlu0 %1949 }
 0x37d   :  { %v2341_v17 = vpop.f32.mrb[33].mxu1 }
 0x37e   :  { %v2011_v18 = vmul.f32 %v1910_v47, %v1787_v14  ;;  %v1788_v19 = vmax.f32 %v1674_v30, %v1756_v15  ;;  %v2342_v0 = vadd.f32 %v2341_v17, %v2340_v16  ;;  %v2343_v8 = vpop.f32.mrb[34].mxu1  ;;  %v1388_v59 = vpop.permute.xlu1 %1387 }
 0x37f   :  { %v2344_v28 = vpop.f32.mrb[35].mxu1 }
 0x380   :  { %v2042_v6 = vadd.f32 %v2041_v25, %v2011_v18  ;;  %v2012_v33 = vmul.f32 %v1915_v11, %v1788_v19  ;;  %v1679_v39 = vadd.f32 %v2342_v0, %v3372_v36  ;;  %v2345_v58 = vadd.f32 %v2344_v28, %v2343_v8  ;;  %v1955_v17 = vpop.permute.xlu0 %1954 }
 0x382   :  { %v2043_v46 = vadd.f32 %v2042_v6, %v2012_v33  ;;  %v1757_v55 = vmul.f32 0.01, %v1679_v39  ;;  %v1682_v40 = vadd.f32 %v2345_v58, %v3374_v3  ;;  %v1393_v45 = vpop.permute.xlu1 %1392 }
 0x384   :  { %v1789_v34 = vmax.f32 %v1679_v39, %v1757_v55  ;;  %v1758_v50 = vmul.f32 0.01, %v1682_v40  ;;  %v2346_v51 = vpop.f32.mrb[36].mxu1 }
 0x385   :  { %v2347_v52 = vpop.f32.mrb[37].mxu1 }
 0x386   :  { %v2013_v53 = vmul.f32 %v1920_v63, %v1789_v34  ;;  %v1790_v54 = vmax.f32 %v1682_v40, %v1758_v50  ;;  %v2348_v21 = vadd.f32 %v2347_v52, %v2346_v51  ;;  %v2349_v26 = vpop.f32.mrb[38].mxu1 }
 0x387   :  { %v2350_v47 = vpop.f32.mrb[39].mxu1 }
 0x388   :  { %v2044_v2 = vadd.f32 %v2043_v46, %v2013_v53  ;;  %v2014_v31 = vmul.f32 %v1925_v29, %v1790_v54  ;;  %v1687_v36 = vadd.f32 %v2348_v21, %v3376_v27  ;;  %v2351_v24 = vadd.f32 %v2350_v47, %v2349_v26  ;;  %v1960_v46 = vpop.permute.xlu0 %1959 }
 0x38a   :  { %v2045_v35 = vadd.f32 %v2044_v2, %v2014_v31  ;;  %v1759_v56 = vmul.f32 0.01, %v1687_v36  ;;  %v1690_v3 = vadd.f32 %v2351_v24, %v3378_v41 }
 0x38c   :  { %v1791_v32 = vmax.f32 %v1687_v36, %v1759_v56  ;;  %v1760_v37 = vmul.f32 0.01, %v1690_v3  ;;  %v2352_v11 = vpop.f32.mrb[40].mxu1  ;;  %v1965_v31 = vpop.permute.xlu0 %1964 }
 0x38d   :  { %v2353_v60 = vpop.f32.mrb[41].mxu1 }
 0x38e   :  { %v2015_v61 = vmul.f32 %v1930_v13, %v1791_v32  ;;  %v1792_v63 = vmax.f32 %v1690_v3, %v1760_v37  ;;  %v2354_v1 = vadd.f32 %v2353_v60, %v2352_v11  ;;  %v2355_v4 = vpop.f32.mrb[42].mxu1 }
 0x38f   :  { %v2356_v5 = vpop.f32.mrb[43].mxu1 }
 0x390   :  { %v2046_v7 = vadd.f32 %v2045_v35, %v2015_v61  ;;  %v2016_v42 = vmul.f32 %v1935_v23, %v1792_v63  ;;  %v1695_v27 = vadd.f32 %v2354_v1, %v3380_v43  ;;  %v2357_v22 = vadd.f32 %v2356_v5, %v2355_v4  ;;  %v1398_v23 = vpop.permute.xlu1 %1397 }
 0x392   :  { %v2047_v10 = vadd.f32 %v2046_v7, %v2016_v42  ;;  %v1761_v38 = vmul.f32 0.01, %v1695_v27  ;;  %v1698_v41 = vadd.f32 %v2357_v22, %v3382_v48 }
 0x394   :  { %v1793_v29 = vmax.f32 %v1695_v27, %v1761_v38  ;;  %v1762_v25 = vmul.f32 0.01, %v1698_v41  ;;  %v2358_v12 = vpop.f32.mrb[44].mxu1 }
 0x395   :  { %v2359_v30 = vpop.f32.mrb[45].mxu1 }
 0x396   :  { %v2017_v13 = vmul.f32 %v1940_v20, %v1793_v29  ;;  %v1794_v14 = vmax.f32 %v1698_v41, %v1762_v25  ;;  %v2360_v15 = vadd.f32 %v2359_v30, %v2358_v12  ;;  %v2361_v16 = vpop.f32.mrb[46].mxu1  ;;  %v1403_v20 = vpop.permute.xlu1 %1402 }
 0x397   :  { %v2362_v18 = vpop.f32.mrb[47].mxu1 }
 0x398   :  { %v2048_v19 = vadd.f32 %v2047_v10, %v2017_v13  ;;  %v2018_v0 = vmul.f32 %v1945_v57, %v1794_v14  ;;  %v1703_v43 = vadd.f32 %v2360_v15, %v3384_v62  ;;  %v2363_v8 = vadd.f32 %v2362_v18, %v2361_v16 }
 0x39a   :  { %v2049_v28 = vadd.f32 %v2048_v19, %v2018_v0  ;;  %v1763_v6 = vmul.f32 0.01, %v1703_v43  ;;  %v1706_v48 = vadd.f32 %v2363_v8, %v1378_v44  ;;  %v1408_v35 = vpop.permute.xlu1 %1407 }
 0x39c   :  { %v1795_v33 = vmax.f32 %v1703_v43, %v1763_v6  ;;  %v1764_v39 = vmul.f32 0.01, %v1706_v48  ;;  %v2364_v58 = vpop.f32.mrb[48].mxu1 }
 0x39d   :  { %v2365_v55 = vpop.f32.mrb[49].mxu1 }
 0x39e   :  { %v2019_v40 = vmul.f32 %v1950_v9, %v1795_v33  ;;  %v1796_v34 = vmax.f32 %v1706_v48, %v1764_v39  ;;  %v2366_v50 = vadd.f32 %v2365_v55, %v2364_v58  ;;  %v2367_v51 = vpop.f32.mrb[50].mxu1 }
 0x39f   :  { %v2368_v52 = vpop.f32.mrb[51].mxu1 }
 0x3a0   :  { %v2050_v53 = vadd.f32 %v2049_v28, %v2019_v40  ;;  %v2020_v54 = vmul.f32 %v1955_v17, %v1796_v34  ;;  %v1711_v21 = vadd.f32 %v2366_v50, %v1383_v49  ;;  %v2369_v62 = vadd.f32 %v2368_v52, %v2367_v51  ;;  %v1970_v49 = vpop.permute.xlu0 %1969 }
 0x3a2   :  { %v2051_v26 = vadd.f32 %v2050_v53, %v2020_v54  ;;  %v1765_v47 = vmul.f32 0.01, %v1711_v21  ;;  %v1714_v2 = vadd.f32 %v2369_v62, %v1388_v59  ;;  %v1413_v59 = vpop.permute.xlu1 %1412 }
 0x3a4   :  { %v1797_v44 = vmax.f32 %v1711_v21, %v1765_v47  ;;  %v1766_v36 = vmul.f32 0.01, %v1714_v2  ;;  %v2370_v24 = vpop.f32.mrb[52].mxu1  ;;  %v1975_v25 = vpop.permute.xlu0 %1974 }
 0x3a5   :  { %v2371_v56 = vpop.f32.mrb[53].mxu1 }
 0x3a6   :  { %v2021_v3 = vmul.f32 %v1960_v46, %v1797_v44  ;;  %v1798_v57 = vmax.f32 %v1714_v2, %v1766_v36  ;;  %v2372_v32 = vadd.f32 %v2371_v56, %v2370_v24  ;;  %v2373_v37 = vpop.f32.mrb[54].mxu1  ;;  %v1418_v15 = vpop.permute.xlu1 %1417 }
 0x3a7   :  { %v2374_v11 = vpop.f32.mrb[55].mxu1 }
 0x3a8   :  { %v2052_v60 = vadd.f32 %v2051_v26, %v2021_v3  ;;  %v2022_v61 = vmul.f32 %v1965_v31, %v1798_v57  ;;  %v1719_v63 = vadd.f32 %v2372_v32, %v1393_v45  ;;  %v2375_v1 = vadd.f32 %v2374_v11, %v2373_v37  ;;  %v1980_v8 = vpop.permute.xlu0 %1979 }
 0x3a9   :  { %v2072_v31 = vlaneseq }
 0x3aa   :  { %v2053_v4 = vadd.f32 %v2052_v60, %v2022_v61  ;;  %v1767_v5 = vmul.f32 0.01, %v1719_v63  ;;  %v1722_v7 = vadd.f32 %v2375_v1, %v1398_v23  ;;  %v1985_v39 = vpop.permute.xlu1 %1984 }
 0x3ab   :  { %v2073_v24 = vshrl.u32 %v2072_v31, 7 }
 0x3ac   :  { %v1799_v42 = vmax.f32 %v1719_v63, %v1767_v5  ;;  %v1768_v27 = vmul.f32 0.01, %v1722_v7  ;;  %v2376_v22 = vpop.f32.mrb[56].mxu1  ;;  %v1990_v54 = vpop.permute.xlu0 %1989 }
 0x3ad   :  { %v2377_v9 = vpop.f32.mrb[57].mxu1  ;;  %v2074_v3 = vsub.s32 0, %v2073_v24 }
 0x3ae   :  { %v2023_v10 = vmul.f32 %v1970_v49, %v1799_v42  ;;  %v1800_v38 = vmax.f32 %v1722_v7, %v1768_v27  ;;  %v2378_v41 = vadd.f32 %v2377_v9, %v2376_v22  ;;  %v2379_v29 = vpop.f32.mrb[58].mxu1  ;;  %v1995_v26 = vpop.permute.xlu1 %1994 }
 0x3af   :  { %v2380_v12 = vpop.f32.mrb[59].mxu1 }
 0x3b0   :  { %v2054_v30 = vadd.f32 %v2053_v4, %v2023_v10  ;;  %v2024_v13 = vmul.f32 %v1975_v25, %v1800_v38  ;;  %v1727_v14 = vadd.f32 %v2378_v41, %v1403_v20  ;;  %v2381_v45 = vadd.f32 %v2380_v12, %v2379_v29  ;;  %v2070_v32 = vpop.permute.xlu0 %2069 }
 0x3b1   :  { %v2075_v11 = vrot.slane %v2070_v32, %v2074_v3 }
 0x3b2   :  { %v2055_v16 = vadd.f32 %v2054_v30, %v2024_v13  ;;  %v1769_v17 = vmul.f32 0.01, %v1727_v14  ;;  %v1730_v18 = vadd.f32 %v2381_v45, %v1408_v35 }
 0x3b4   :  { %v1801_v19 = vmax.f32 %v1727_v14, %v1769_v17  ;;  %v1770_v0 = vmul.f32 0.01, %v1730_v18  ;;  %v2382_v43 = vpop.f32.mrb[60].mxu1 }
 0x3b5   :  { %v2383_v23 = vpop.f32.mrb[61].mxu1 }
 0x3b6   :  { %v2025_v28 = vmul.f32 %v1980_v8, %v1801_v19  ;;  %v1802_v6 = vmax.f32 %v1730_v18, %v1770_v0  ;;  %v2384_v48 = vadd.f32 %v2383_v23, %v2382_v43  ;;  %v2385_v33 = vpop.f32.mrb[62].mxu1 }
 0x3b7   :  { %v2386_v58 = vpop.f32.mrb[63].mxu1 }
 0x3b8   :  { %v2056_v46 = vadd.f32 %v2055_v16, %v2025_v28  ;;  %v2026_v55 = vmul.f32 %v1985_v39, %v1802_v6  ;;  %v1735_v40 = vadd.f32 %v2384_v48, %v1413_v59  ;;  %v2387_v34 = vadd.f32 %v2386_v58, %v2385_v33 }
 0x3ba   :  { %v2057_v50 = vadd.f32 %v2056_v46, %v2026_v55  ;;  %v1771_v51 = vmul.f32 0.01, %v1735_v40  ;;  %v1738_v20 = vadd.f32 %v2387_v34, %v1418_v15 }
 0x3bc   :  { %v1803_v52 = vmax.f32 %v1735_v40, %v1771_v51  ;;  %v1772_v53 = vmul.f32 0.01, %v1738_v20 }
 0x3be   :  { %v2027_v21 = vmul.f32 %v1990_v54, %v1803_v52  ;;  %v1804_v62 = vmax.f32 %v1738_v20, %v1772_v53 }
 0x3c0   :  { %v2058_v47 = vadd.f32 %v2057_v50, %v2027_v21  ;;  %v2028_v2 = vmul.f32 %v1995_v26, %v1804_v62 }
 0x3c2   :  { %v2059_v44 = vadd.f32 %v2058_v47, %v2028_v2 }
 0x3c4   :  { %v2060_v36 = vrot.slane %v2059_v44, 4 }
 0x3c6   :  { %v2061_v35 = vadd.f32 %v2060_v36, %v2059_v44 }
 0x3c8   :  { %v2062_v56 = vrot.slane %v2061_v35, 2 }
 0x3ca   :  { %v2063_v57 = vadd.f32 %v2062_v56, %v2061_v35 }
 0x3cc   :  { %v2064_v37 = vrot.slane %v2063_v57, 1 }
 0x3ce   :  { %v2065_v60 = vadd.f32 %v2064_v37, %v2063_v57 }
 0x3d0   :  { %v2076_v61 = vadd.f32 %v2075_v11, %v2065_v60 }
 0x3d2   :  { %v2163_v63 = vmul.f32 -1.442695, %v2076_v61 }
 0x3d4   :  { %2488 = vpow2.f32 %v2163_v63 }
 0x3de   :  { %v2489_v1 = vpop.eup %2488 }
 0x3df   :  { %v2080_v49 = vadd.f32 1.0, %v2489_v1 }
 0x3e1   :  { %2490 = vrcp.f32 %v2080_v49 }
 0x3eb   :  { %v2491_v4 = vpop.eup %2490 }
 0x3ec   :  { %2083 = vst [vmem:[#allocation3] sm:$0x1] %v2491_v4 }
 0x3ed   :  { %2503 = shalt.err (!%p2500_p4)
}
 0x3ee   :  { %s2504_s12 = scalar_lea.hbm %s3424_s9, 16 }
 0x3ef   :  { %p2505_p5 = scmp.ne.s32.totalorder %s3424_s9, %s2504_s12  ;;  %p2508_p6 = scmp.lt.u32.totalorder %s2504_s12, %s3424_s9 }
 0x3f1   :  { %p2510_p7 = pnand %p2508_p6, %p2505_p5 }
 0x3f3   :  { %2513 = shalt.err (!%p2510_p7)
}
 0x3f4   :  { %2093 = dma.vmem_to_hbm [thread:$0]  %s2091_s28, 16, %s3424_s9, [#allocation4]  }
 0x3f5   :  { %2514 = dma.done.wait [#allocation4], 16  }
 0x3f6   :  { %2515 = vsyncadd [#allocation4], 4294967280 }
 0x3f7   :  { %2097 = vsyncpa [#allocation4], 1 }

</bundles_post_ra>
